<compile_context>
chip_gen: v7x
topology: tpu7x:2x2x1
jax: 0.10.0
libtpu: 0.0.40
codegen_flags: <defaults>
</compile_context>

<pallas_src>
import jax
import jax.numpy as jnp
from jax.experimental import pallas as pl
from jax.experimental.pallas import tpu as pltpu

# ---- small shapes consistent with the module's forward ----
B = 2       # batch
S = 8       # sequence length
H = 32      # "bert" hidden size (stands in for 768)
HL = 32     # lstm hidden size   (stands in for 256)
F = 64      # encoder FFN inner size
V = 64      # vocab size
NUM_LSTM_LAYERS = 2
BS = B * S          # flattened (time-major) token count
G = 4 * HL          # fused LSTM gate width (= 128 lanes exactly)

_VMEM = pl.BlockSpec(memory_space=pltpu.MemorySpace.VMEM)

NEG_PAD = -1e9      # additive bias for attention-masked keys (matches reference)
NEG_XBATCH = -1e30  # additive bias for cross-batch entries of the block-diag attention


def _layer_norm(x, gamma, beta, eps=1e-12):
    mean = jnp.mean(x, axis=-1, keepdims=True)
    var = jnp.mean((x - mean) ** 2, axis=-1, keepdims=True)
    return (x - mean) * jax.lax.rsqrt(var + eps) * gamma + beta


# ----------------------------------------------------------------------------
# Fused kernel: encoder layer + 2-layer LSTM + head, all VMEM-resident
# ----------------------------------------------------------------------------
def chatbot_kernel(x_ref, bias_ref,
                   wqkv_ref, bqkv_ref, wo_ref, bo_ref,
                   ln1g_ref, ln1b_ref, ln2g_ref, ln2b_ref,
                   w1_ref, b1_ref, w2_ref, b2_ref,
                   h0_ref, c0_ref,
                   wih0_ref, whh0_ref, bl0_ref,
                   wih1_ref, whh1_ref, bl1_ref,
                   wlb_ref, wll_ref, blin_ref,
                   out_ref, hn_ref, cn_ref):
    f32 = jnp.float32
    x2d = x_ref[...]                                   # [BS, H], time-major rows (t, b)

    # ---------------- BERT-style encoder layer (flattened, wide matmuls) -----
    # Fused QKV: one [BS,H] @ [H,3H] dot (96 output lanes) instead of 3 batched einsums.
    qkv = jnp.dot(x2d, wqkv_ref[...], preferred_element_type=f32) + bqkv_ref[...]
    q = qkv[:, 0 * H:1 * H]
    k = qkv[:, 1 * H:2 * H]
    v = qkv[:, 2 * H:3 * H]

    scale = 1.0 / jnp.sqrt(f32(H))
    # Block-diagonal attention: one [BS,H]x[BS,H]^T matmul; cross-batch entries
    # are killed by the additive bias (NEG_XBATCH) so results equal the batched form.
    scores = jax.lax.dot_general(
        q, k, (((1,), (1,)), ((), ())), preferred_element_type=f32) * scale
    scores = scores + bias_ref[...]

    p = jnp.exp(scores - jnp.max(scores, axis=-1, keepdims=True))
    p = p * pl.reciprocal(jnp.sum(p, axis=-1, keepdims=True), approx=True)

    ctx = jnp.dot(p, v, preferred_element_type=f32)                       # [BS, H]
    attn = jnp.dot(ctx, wo_ref[...], preferred_element_type=f32) + bo_ref[...]

    h1 = _layer_norm(x2d + attn, ln1g_ref[...], ln1b_ref[...])
    ffn = jax.nn.gelu(jnp.dot(h1, w1_ref[...], preferred_element_type=f32) + b1_ref[...])
    ffn = jnp.dot(ffn, w2_ref[...], preferred_element_type=f32) + b2_ref[...]
    bert2d = _layer_norm(h1 + ffn, ln2g_ref[...], ln2b_ref[...])          # [BS, H]

    # ---------------- 2-layer LSTM, fully unrolled over S --------------------
    # Gate layout on lanes: [ i | f | g | o ] (PyTorch order), 4*HL = 128 lanes.
    lane = jax.lax.broadcasted_iota(jnp.int32, (B, G), 1)
    g_mask = (lane >= 2 * HL) & (lane < 3 * HL)        # gate 'g' -> tanh, rest sigmoid

    wih0 = wih0_ref[...]; whh0 = whh0_ref[...]; bl0 = bl0_ref[...]
    wih1 = wih1_ref[...]; whh1 = whh1_ref[...]; bl1 = bl1_ref[...]

    def cell(x_t, h, c, wih, whh, b):
        # Two full-128-lane gate matmuls; activations applied on the whole vreg
        # (one tanh + one sigmoid + select) instead of four 32-lane slices.
        gates = (jnp.dot(x_t, wih, preferred_element_type=f32)
                 + jnp.dot(h, whh, preferred_element_type=f32) + b)       # [B, 128]
        act = jnp.where(g_mask, jnp.tanh(gates), jax.nn.sigmoid(gates))
        i = act[:, 0 * HL:1 * HL]          # static single-vreg lane selects
        f = act[:, 1 * HL:2 * HL]
        g = act[:, 2 * HL:3 * HL]
        o = act[:, 3 * HL:4 * HL]
        c_new = f * c + i * g
        h_new = o * jnp.tanh(c_new)
        return h_new, c_new

    h_0, c_0 = h0_ref[0], c0_ref[0]
    h_1, c_1 = h0_ref[1], c0_ref[1]

    mean_acc = jnp.zeros((B, H), f32)
    for t in range(S):                                 # static unroll (S = 8)
        x_t = bert2d[t * B:(t + 1) * B, :]             # contiguous time-major slice [B, H]
        mean_acc = mean_acc + x_t                      # reuse slice for mean(bert_out, 1)
        h_0, c_0 = cell(x_t, h_0, c_0, wih0, whh0, bl0)
        h_1, c_1 = cell(h_0, h_1, c_1, wih1, whh1, bl1)

    hn_ref[0] = h_0
    hn_ref[1] = h_1
    cn_ref[0] = c_0
    cn_ref[1] = c_1

    # ---------------- head: split linear (no concat), ReLU -------------------
    bert_mean = mean_acc * (1.0 / S)
    y = (jnp.dot(bert_mean, wlb_ref[...], preferred_element_type=f32)
         + jnp.dot(h_1, wll_ref[...], preferred_element_type=f32)
         + blin_ref[...])
    out_ref[...] = jnp.maximum(y, 0.0)


# ----------------------------------------------------------------------------
# Static cost estimate (advisory)
# ----------------------------------------------------------------------------
def _static_costs():
    mm = 0
    mm += 2 * BS * H * (3 * H)     # qkv
    mm += 2 * BS * H * BS          # scores
    mm += 2 * BS * BS * H          # ctx
    mm += 2 * BS * H * H           # attn out
    mm += 2 * BS * H * F           # ffn up
    mm += 2 * BS * F * H           # ffn down
    mm += S * NUM_LSTM_LAYERS * (2 * B * H * G + 2 * B * HL * G)   # lstm gates
    mm += 2 * B * H * H + 2 * B * HL * H                            # head
    trans = BS * BS + BS * F + S * NUM_LSTM_LAYERS * (2 * B * G + B * HL)
    return mm, trans


_FLOPS, _TRANSCENDENTALS = _static_costs()


# ----------------------------------------------------------------------------
# Wrapper: input prep (embedding gather, time-major layout, attention bias)
# ----------------------------------------------------------------------------
@jax.jit
def chatbot_forward(input_ids, attention_mask, hidden, params):
    h0, c0 = hidden

    # Embedding lookup stays in XLA (tiny gather).
    # TODO(synk): could move in-kernel via PrefetchScalarGridSpec scalar prefetch.
    x = jnp.take(params['tok_emb'], input_ids, axis=0) + params['pos_emb'][None, :, :]

    # Time-major flatten [B,S,H] -> [S*B,H]: layout plumbing done in the wrapper
    # so the kernel never transposes and LSTM steps are contiguous slices.
    x_tm = jnp.transpose(x, (1, 0, 2)).reshape(BS, H)

    # Additive attention bias [BS,BS]: -1e9 on masked keys (matches reference),
    # -1e30 on cross-batch entries of the block-diagonal flattened attention.
    mask = attention_mask.astype(jnp.float32)                 # [B, S], 1.0 = attend
    key_valid = jnp.transpose(mask, (1, 0)).reshape(1, BS)    # time-major flatten
    idx = jnp.arange(BS)
    same_batch = (idx[:, None] % B) == (idx[None, :] % B)
    bias = jnp.where(same_batch, (1.0 - key_valid) * NEG_PAD, NEG_XBATCH)

    args = (x_tm, bias,
            params['wqkv'], params['bqkv'], params['wo'], params['bo'],
            params['ln1g'], params['ln1b'], params['ln2g'], params['ln2b'],
            params['w1'], params['b1'], params['w2'], params['b2'],
            h0, c0,
            params['wih0'], params['whh0'], params['b_l0'],
            params['wih1'], params['whh1'], params['b_l1'],
            params['wlin_bert'], params['wlin_lstm'], params['b_lin'])

    out_shapes = (jax.ShapeDtypeStruct((B, H), jnp.float32),
                  jax.ShapeDtypeStruct((NUM_LSTM_LAYERS, B, HL), jnp.float32),
                  jax.ShapeDtypeStruct((NUM_LSTM_LAYERS, B, HL), jnp.float32))

    bytes_accessed = sum(int(a.size) * a.dtype.itemsize for a in args)
    bytes_accessed += 4 * (B * H + 2 * NUM_LSTM_LAYERS * B * HL)

    combined, h_n, c_n = pl.pallas_call(
        chatbot_kernel,
        out_shape=out_shapes,
        in_specs=[_VMEM] * len(args),
        out_specs=(_VMEM, _VMEM, _VMEM),
        cost_estimate=pl.CostEstimate(flops=_FLOPS,
                                      transcendentals=_TRANSCENDENTALS,
                                      bytes_accessed=bytes_accessed),
    )(*args)
    return combined, (h_n, c_n)


# ----------------------------------------------------------------------------
# Parameter init (deterministic) and hidden-state init
# ----------------------------------------------------------------------------
def init_params(key):
    ks = jax.random.split(key, 20)
    n = lambda i, shape, scale=0.05: (scale * jax.random.normal(ks[i], shape)
                                      ).astype(jnp.float32)
    return {
        # embeddings
        'tok_emb': n(0, (V, H), 0.1),
        'pos_emb': n(1, (S, H), 0.1),
        # encoder layer (QKV fused into one [H, 3H] slab)
        'wqkv': n(2, (H, 3 * H)), 'bqkv': n(3, (1, 3 * H)),
        'wo': n(4, (H, H)), 'bo': n(5, (1, H)),
        'ln1g': jnp.ones((1, H), jnp.float32), 'ln1b': jnp.zeros((1, H), jnp.float32),
        'ln2g': jnp.ones((1, H), jnp.float32), 'ln2b': jnp.zeros((1, H), jnp.float32),
        'w1': n(6, (H, F)), 'b1': n(7, (1, F)),
        'w2': n(8, (F, H)), 'b2': n(9, (1, H)),
        # lstm layer 0 (input H) and layer 1 (input HL); weights pre-transposed,
        # the single bias per layer stands for (b_ih + b_hh)
        'wih0': n(10, (H, G)), 'whh0': n(11, (HL, G)), 'b_l0': n(12, (1, G)),
        'wih1': n(13, (HL, G)), 'whh1': n(14, (HL, G)), 'b_l1': n(15, (1, G)),
        # final linear (H + HL -> H), split to avoid in-kernel concat
        'wlin_bert': n(16, (H, H)), 'wlin_lstm': n(17, (HL, H)), 'b_lin': n(18, (1, H)),
    }


def init_hidden(batch_size):
    return (jnp.zeros((NUM_LSTM_LAYERS, batch_size, HL), jnp.float32),
            jnp.zeros((NUM_LSTM_LAYERS, batch_size, HL), jnp.float32))


if __name__ == "__main__":
    key = jax.random.PRNGKey(0)
    k_par, k_ids = jax.random.split(key)

    params = init_params(k_par)
    input_ids = jax.random.randint(k_ids, (B, S), 0, V, dtype=jnp.int32)
    attention_mask = jnp.ones((B, S), jnp.int32).at[1, S - 2:].set(0)  # pad tail of batch 1
    hidden = init_hidden(B)

    combined, (h_n, c_n) = chatbot_forward(input_ids, attention_mask, hidden, params)
    jax.block_until_ready((combined, h_n, c_n))

    assert combined.shape == (B, H)
    assert h_n.shape == (NUM_LSTM_LAYERS, B, HL) and c_n.shape == (NUM_LSTM_LAYERS, B, HL)
    assert bool(jnp.all(jnp.isfinite(combined)))
    print("KERNEL_OK")
</pallas_src>

<mosaic_0001>
module attributes {stable_mosaic.version = 11 : i64} {
  func.func @chatbot_kernel(%arg0: memref<16x32xf32, #tpu.memory_space<vmem>>, %arg1: memref<16x16xf32, #tpu.memory_space<vmem>>, %arg2: memref<32x96xf32, #tpu.memory_space<vmem>>, %arg3: memref<1x96xf32, #tpu.memory_space<vmem>>, %arg4: memref<32x32xf32, #tpu.memory_space<vmem>>, %arg5: memref<1x32xf32, #tpu.memory_space<vmem>>, %arg6: memref<1x32xf32, #tpu.memory_space<vmem>>, %arg7: memref<1x32xf32, #tpu.memory_space<vmem>>, %arg8: memref<1x32xf32, #tpu.memory_space<vmem>>, %arg9: memref<1x32xf32, #tpu.memory_space<vmem>>, %arg10: memref<32x64xf32, #tpu.memory_space<vmem>>, %arg11: memref<1x64xf32, #tpu.memory_space<vmem>>, %arg12: memref<64x32xf32, #tpu.memory_space<vmem>>, %arg13: memref<1x32xf32, #tpu.memory_space<vmem>>, %arg14: memref<2x2x32xf32, #tpu.memory_space<vmem>>, %arg15: memref<2x2x32xf32, #tpu.memory_space<vmem>>, %arg16: memref<32x128xf32, #tpu.memory_space<vmem>>, %arg17: memref<32x128xf32, #tpu.memory_space<vmem>>, %arg18: memref<1x128xf32, #tpu.memory_space<vmem>>, %arg19: memref<32x128xf32, #tpu.memory_space<vmem>>, %arg20: memref<32x128xf32, #tpu.memory_space<vmem>>, %arg21: memref<1x128xf32, #tpu.memory_space<vmem>>, %arg22: memref<32x32xf32, #tpu.memory_space<vmem>>, %arg23: memref<32x32xf32, #tpu.memory_space<vmem>>, %arg24: memref<1x32xf32, #tpu.memory_space<vmem>>, %arg25: memref<2x32xf32, #tpu.memory_space<vmem>>, %arg26: memref<2x2x32xf32, #tpu.memory_space<vmem>>, %arg27: memref<2x2x32xf32, #tpu.memory_space<vmem>>) attributes {dimension_semantics = [], scalar_prefetch = 0 : i64, scratch_operands = 0 : i64, tpu.core_type = #tpu.core_type<tc>} {
    %c0 = arith.constant 0 : index
    %c0_0 = arith.constant 0 : index
    %0 = vector.load %arg0[%c0, %c0_0] : memref<16x32xf32, #tpu.memory_space<vmem>>, vector<16x32xf32>
    %c0_1 = arith.constant 0 : index
    %c0_2 = arith.constant 0 : index
    %1 = vector.load %arg2[%c0_1, %c0_2] : memref<32x96xf32, #tpu.memory_space<vmem>>, vector<32x96xf32>
    %cst = arith.constant dense<0.000000e+00> : vector<16x96xf32>
    %2 = tpu.matmul %0, %1, %cst {dimension_numbers = #tpu.dot_dimension_numbers<[1], [0], [0], [1], [0, 0, 1, 1], [], []>} : vector<16x32xf32>, vector<32x96xf32>, vector<16x96xf32> -> vector<16x96xf32>
    %c0_3 = arith.constant 0 : index
    %c0_4 = arith.constant 0 : index
    %3 = vector.load %arg3[%c0_3, %c0_4] : memref<1x96xf32, #tpu.memory_space<vmem>>, vector<1x96xf32>
    %4 = vector.broadcast %3 : vector<1x96xf32> to vector<16x96xf32>
    %5 = arith.addf %2, %4 : vector<16x96xf32>
    %6 = vector.extract_strided_slice %5 {offsets = [0, 0], sizes = [16, 32], strides = [1, 1]} : vector<16x96xf32> to vector<16x32xf32>
    %7 = vector.extract_strided_slice %5 {offsets = [0, 32], sizes = [16, 32], strides = [1, 1]} : vector<16x96xf32> to vector<16x32xf32>
    %8 = vector.extract_strided_slice %5 {offsets = [0, 64], sizes = [16, 32], strides = [1, 1]} : vector<16x96xf32> to vector<16x32xf32>
    %cst_5 = arith.constant 3.200000e+01 : f32
    %9 = math.sqrt %cst_5 : f32
    %cst_6 = arith.constant 1.000000e+00 : f32
    %10 = arith.divf %cst_6, %9 : f32
    %cst_7 = arith.constant dense<0.000000e+00> : vector<16x16xf32>
    %11 = tpu.matmul %6, %7, %cst_7 {dimension_numbers = #tpu.dot_dimension_numbers<[1], [1], [0], [0], [0, 0, 1, 0], [], []>} : vector<16x32xf32>, vector<16x32xf32>, vector<16x16xf32> -> vector<16x16xf32>
    %12 = vector.broadcast %10 : f32 to vector<16x16xf32>
    %13 = arith.mulf %11, %12 : vector<16x16xf32>
    %c0_8 = arith.constant 0 : index
    %c0_9 = arith.constant 0 : index
    %14 = vector.load %arg1[%c0_8, %c0_9] : memref<16x16xf32, #tpu.memory_space<vmem>>, vector<16x16xf32>
    %15 = arith.addf %13, %14 : vector<16x16xf32>
    %cst_10 = arith.constant dense<0xFF800000> : vector<16xf32>
    %16 = vector.multi_reduction <maximumf>, %15, %cst_10 [1] : vector<16x16xf32> to vector<16xf32>
    %17 = vector.shape_cast %16 : vector<16xf32> to vector<16x1xf32>
    %18 = vector.broadcast %17 : vector<16x1xf32> to vector<16x16xf32>
    %19 = arith.subf %15, %18 : vector<16x16xf32>
    %20 = math.exp %19 : vector<16x16xf32>
    %cst_11 = arith.constant dense<0.000000e+00> : vector<16xf32>
    %21 = vector.multi_reduction <add>, %20, %cst_11 [1] : vector<16x16xf32> to vector<16xf32>
    %22 = vector.shape_cast %21 : vector<16xf32> to vector<16x1xf32>
    %23 = tpu.reciprocal %22 {approx = true} : vector<16x1xf32> -> vector<16x1xf32>
    %24 = vector.broadcast %23 : vector<16x1xf32> to vector<16x16xf32>
    %25 = arith.mulf %20, %24 : vector<16x16xf32>
    %cst_12 = arith.constant dense<0.000000e+00> : vector<16x32xf32>
    %26 = tpu.matmul %25, %8, %cst_12 {dimension_numbers = #tpu.dot_dimension_numbers<[1], [0], [0], [1], [0, 0, 1, 1], [], []>} : vector<16x16xf32>, vector<16x32xf32>, vector<16x32xf32> -> vector<16x32xf32>
    %c0_13 = arith.constant 0 : index
    %c0_14 = arith.constant 0 : index
    %27 = vector.load %arg4[%c0_13, %c0_14] : memref<32x32xf32, #tpu.memory_space<vmem>>, vector<32x32xf32>
    %cst_15 = arith.constant dense<0.000000e+00> : vector<16x32xf32>
    %28 = tpu.matmul %26, %27, %cst_15 {dimension_numbers = #tpu.dot_dimension_numbers<[1], [0], [0], [1], [0, 0, 1, 1], [], []>} : vector<16x32xf32>, vector<32x32xf32>, vector<16x32xf32> -> vector<16x32xf32>
    %c0_16 = arith.constant 0 : index
    %c0_17 = arith.constant 0 : index
    %29 = vector.load %arg5[%c0_16, %c0_17] : memref<1x32xf32, #tpu.memory_space<vmem>>, vector<1x32xf32>
    %30 = vector.broadcast %29 : vector<1x32xf32> to vector<16x32xf32>
    %31 = arith.addf %28, %30 : vector<16x32xf32>
    %32 = arith.addf %0, %31 : vector<16x32xf32>
    %c0_18 = arith.constant 0 : index
    %c0_19 = arith.constant 0 : index
    %33 = vector.load %arg6[%c0_18, %c0_19] : memref<1x32xf32, #tpu.memory_space<vmem>>, vector<1x32xf32>
    %c0_20 = arith.constant 0 : index
    %c0_21 = arith.constant 0 : index
    %34 = vector.load %arg7[%c0_20, %c0_21] : memref<1x32xf32, #tpu.memory_space<vmem>>, vector<1x32xf32>
    %cst_22 = arith.constant dense<0.000000e+00> : vector<16xf32>
    %35 = vector.multi_reduction <add>, %32, %cst_22 [1] : vector<16x32xf32> to vector<16xf32>
    %36 = vector.shape_cast %35 : vector<16xf32> to vector<16x1xf32>
    %cst_23 = arith.constant 3.200000e+01 : f32
    %37 = vector.broadcast %cst_23 : f32 to vector<16x1xf32>
    %38 = arith.divf %36, %37 : vector<16x1xf32>
    %39 = vector.broadcast %38 : vector<16x1xf32> to vector<16x32xf32>
    %40 = arith.subf %32, %39 : vector<16x32xf32>
    %41 = arith.mulf %40, %40 : vector<16x32xf32>
    %cst_24 = arith.constant dense<0.000000e+00> : vector<16xf32>
    %42 = vector.multi_reduction <add>, %41, %cst_24 [1] : vector<16x32xf32> to vector<16xf32>
    %43 = vector.shape_cast %42 : vector<16xf32> to vector<16x1xf32>
    %cst_25 = arith.constant 3.200000e+01 : f32
    %44 = vector.broadcast %cst_25 : f32 to vector<16x1xf32>
    %45 = arith.divf %43, %44 : vector<16x1xf32>
    %46 = vector.broadcast %38 : vector<16x1xf32> to vector<16x32xf32>
    %47 = arith.subf %32, %46 : vector<16x32xf32>
    %cst_26 = arith.constant 9.99999996E-13 : f32
    %48 = vector.broadcast %cst_26 : f32 to vector<16x1xf32>
    %49 = arith.addf %45, %48 : vector<16x1xf32>
    %50 = math.rsqrt %49 : vector<16x1xf32>
    %51 = vector.broadcast %50 : vector<16x1xf32> to vector<16x32xf32>
    %52 = arith.mulf %47, %51 : vector<16x32xf32>
    %53 = vector.broadcast %33 : vector<1x32xf32> to vector<16x32xf32>
    %54 = arith.mulf %52, %53 : vector<16x32xf32>
    %55 = vector.broadcast %34 : vector<1x32xf32> to vector<16x32xf32>
    %56 = arith.addf %54, %55 : vector<16x32xf32>
    %c0_27 = arith.constant 0 : index
    %c0_28 = arith.constant 0 : index
    %57 = vector.load %arg10[%c0_27, %c0_28] : memref<32x64xf32, #tpu.memory_space<vmem>>, vector<32x64xf32>
    %cst_29 = arith.constant dense<0.000000e+00> : vector<16x64xf32>
    %58 = tpu.matmul %56, %57, %cst_29 {dimension_numbers = #tpu.dot_dimension_numbers<[1], [0], [0], [1], [0, 0, 1, 1], [], []>} : vector<16x32xf32>, vector<32x64xf32>, vector<16x64xf32> -> vector<16x64xf32>
    %c0_30 = arith.constant 0 : index
    %c0_31 = arith.constant 0 : index
    %59 = vector.load %arg11[%c0_30, %c0_31] : memref<1x64xf32, #tpu.memory_space<vmem>>, vector<1x64xf32>
    %60 = vector.broadcast %59 : vector<1x64xf32> to vector<16x64xf32>
    %61 = arith.addf %58, %60 : vector<16x64xf32>
    %62 = arith.mulf %61, %61 : vector<16x64xf32>
    %63 = arith.mulf %61, %62 : vector<16x64xf32>
    %cst_32 = arith.constant 4.471500e-02 : f32
    %64 = vector.broadcast %cst_32 : f32 to vector<16x64xf32>
    %65 = arith.mulf %64, %63 : vector<16x64xf32>
    %66 = arith.addf %61, %65 : vector<16x64xf32>
    %cst_33 = arith.constant 0.797884583 : f32
    %67 = vector.broadcast %cst_33 : f32 to vector<16x64xf32>
    %68 = arith.mulf %67, %66 : vector<16x64xf32>
    %69 = math.tanh %68 : vector<16x64xf32>
    %cst_34 = arith.constant 1.000000e+00 : f32
    %70 = vector.broadcast %cst_34 : f32 to vector<16x64xf32>
    %71 = arith.addf %70, %69 : vector<16x64xf32>
    %cst_35 = arith.constant 5.000000e-01 : f32
    %72 = vector.broadcast %cst_35 : f32 to vector<16x64xf32>
    %73 = arith.mulf %72, %71 : vector<16x64xf32>
    %74 = arith.mulf %61, %73 : vector<16x64xf32>
    %c0_36 = arith.constant 0 : index
    %c0_37 = arith.constant 0 : index
    %75 = vector.load %arg12[%c0_36, %c0_37] : memref<64x32xf32, #tpu.memory_space<vmem>>, vector<64x32xf32>
    %cst_38 = arith.constant dense<0.000000e+00> : vector<16x32xf32>
    %76 = tpu.matmul %74, %75, %cst_38 {dimension_numbers = #tpu.dot_dimension_numbers<[1], [0], [0], [1], [0, 0, 1, 1], [], []>} : vector<16x64xf32>, vector<64x32xf32>, vector<16x32xf32> -> vector<16x32xf32>
    %c0_39 = arith.constant 0 : index
    %c0_40 = arith.constant 0 : index
    %77 = vector.load %arg13[%c0_39, %c0_40] : memref<1x32xf32, #tpu.memory_space<vmem>>, vector<1x32xf32>
    %78 = vector.broadcast %77 : vector<1x32xf32> to vector<16x32xf32>
    %79 = arith.addf %76, %78 : vector<16x32xf32>
    %80 = arith.addf %56, %79 : vector<16x32xf32>
    %c0_41 = arith.constant 0 : index
    %c0_42 = arith.constant 0 : index
    %81 = vector.load %arg8[%c0_41, %c0_42] : memref<1x32xf32, #tpu.memory_space<vmem>>, vector<1x32xf32>
    %c0_43 = arith.constant 0 : index
    %c0_44 = arith.constant 0 : index
    %82 = vector.load %arg9[%c0_43, %c0_44] : memref<1x32xf32, #tpu.memory_space<vmem>>, vector<1x32xf32>
    %cst_45 = arith.constant dense<0.000000e+00> : vector<16xf32>
    %83 = vector.multi_reduction <add>, %80, %cst_45 [1] : vector<16x32xf32> to vector<16xf32>
    %84 = vector.shape_cast %83 : vector<16xf32> to vector<16x1xf32>
    %cst_46 = arith.constant 3.200000e+01 : f32
    %85 = vector.broadcast %cst_46 : f32 to vector<16x1xf32>
    %86 = arith.divf %84, %85 : vector<16x1xf32>
    %87 = vector.broadcast %86 : vector<16x1xf32> to vector<16x32xf32>
    %88 = arith.subf %80, %87 : vector<16x32xf32>
    %89 = arith.mulf %88, %88 : vector<16x32xf32>
    %cst_47 = arith.constant dense<0.000000e+00> : vector<16xf32>
    %90 = vector.multi_reduction <add>, %89, %cst_47 [1] : vector<16x32xf32> to vector<16xf32>
    %91 = vector.shape_cast %90 : vector<16xf32> to vector<16x1xf32>
    %cst_48 = arith.constant 3.200000e+01 : f32
    %92 = vector.broadcast %cst_48 : f32 to vector<16x1xf32>
    %93 = arith.divf %91, %92 : vector<16x1xf32>
    %94 = vector.broadcast %86 : vector<16x1xf32> to vector<16x32xf32>
    %95 = arith.subf %80, %94 : vector<16x32xf32>
    %cst_49 = arith.constant 9.99999996E-13 : f32
    %96 = vector.broadcast %cst_49 : f32 to vector<16x1xf32>
    %97 = arith.addf %93, %96 : vector<16x1xf32>
    %98 = math.rsqrt %97 : vector<16x1xf32>
    %99 = vector.broadcast %98 : vector<16x1xf32> to vector<16x32xf32>
    %100 = arith.mulf %95, %99 : vector<16x32xf32>
    %101 = vector.broadcast %81 : vector<1x32xf32> to vector<16x32xf32>
    %102 = arith.mulf %100, %101 : vector<16x32xf32>
    %103 = vector.broadcast %82 : vector<1x32xf32> to vector<16x32xf32>
    %104 = arith.addf %102, %103 : vector<16x32xf32>
    %105 = tpu.iota {dimensions = array<i32: 1>} : vector<2x128xi32>
    %c64_i32 = arith.constant 64 : i32
    %106 = vector.broadcast %c64_i32 : i32 to vector<2x128xi32>
    %107 = arith.cmpi sge, %105, %106 : vector<2x128xi32>
    %c96_i32 = arith.constant 96 : i32
    %108 = vector.broadcast %c96_i32 : i32 to vector<2x128xi32>
    %109 = arith.cmpi slt, %105, %108 : vector<2x128xi32>
    %110 = arith.andi %107, %109 : vector<2x128xi1>
    %c0_50 = arith.constant 0 : index
    %c0_51 = arith.constant 0 : index
    %111 = vector.load %arg16[%c0_50, %c0_51] : memref<32x128xf32, #tpu.memory_space<vmem>>, vector<32x128xf32>
    %c0_52 = arith.constant 0 : index
    %c0_53 = arith.constant 0 : index
    %112 = vector.load %arg17[%c0_52, %c0_53] : memref<32x128xf32, #tpu.memory_space<vmem>>, vector<32x128xf32>
    %c0_54 = arith.constant 0 : index
    %c0_55 = arith.constant 0 : index
    %113 = vector.load %arg18[%c0_54, %c0_55] : memref<1x128xf32, #tpu.memory_space<vmem>>, vector<1x128xf32>
    %c0_56 = arith.constant 0 : index
    %c0_57 = arith.constant 0 : index
    %114 = vector.load %arg19[%c0_56, %c0_57] : memref<32x128xf32, #tpu.memory_space<vmem>>, vector<32x128xf32>
    %c0_58 = arith.constant 0 : index
    %c0_59 = arith.constant 0 : index
    %115 = vector.load %arg20[%c0_58, %c0_59] : memref<32x128xf32, #tpu.memory_space<vmem>>, vector<32x128xf32>
    %c0_60 = arith.constant 0 : index
    %c0_61 = arith.constant 0 : index
    %116 = vector.load %arg21[%c0_60, %c0_61] : memref<1x128xf32, #tpu.memory_space<vmem>>, vector<1x128xf32>
    %c0_62 = arith.constant 0 : index
    %c0_63 = arith.constant 0 : index
    %c0_64 = arith.constant 0 : index
    %117 = vector.load %arg14[%c0_62, %c0_63, %c0_64] : memref<2x2x32xf32, #tpu.memory_space<vmem>>, vector<1x2x32xf32>
    %118 = vector.shape_cast %117 : vector<1x2x32xf32> to vector<2x32xf32>
    %c0_65 = arith.constant 0 : index
    %c0_66 = arith.constant 0 : index
    %c0_67 = arith.constant 0 : index
    %119 = vector.load %arg15[%c0_65, %c0_66, %c0_67] : memref<2x2x32xf32, #tpu.memory_space<vmem>>, vector<1x2x32xf32>
    %120 = vector.shape_cast %119 : vector<1x2x32xf32> to vector<2x32xf32>
    %c1 = arith.constant 1 : index
    %c0_68 = arith.constant 0 : index
    %c0_69 = arith.constant 0 : index
    %121 = vector.load %arg14[%c1, %c0_68, %c0_69] : memref<2x2x32xf32, #tpu.memory_space<vmem>>, vector<1x2x32xf32>
    %122 = vector.shape_cast %121 : vector<1x2x32xf32> to vector<2x32xf32>
    %c1_70 = arith.constant 1 : index
    %c0_71 = arith.constant 0 : index
    %c0_72 = arith.constant 0 : index
    %123 = vector.load %arg15[%c1_70, %c0_71, %c0_72] : memref<2x2x32xf32, #tpu.memory_space<vmem>>, vector<1x2x32xf32>
    %124 = vector.shape_cast %123 : vector<1x2x32xf32> to vector<2x32xf32>
    %cst_73 = arith.constant 0.000000e+00 : f32
    %125 = vector.broadcast %cst_73 : f32 to vector<2x32xf32>
    %126 = vector.extract_strided_slice %104 {offsets = [0, 0], sizes = [2, 32], strides = [1, 1]} : vector<16x32xf32> to vector<2x32xf32>
    %127 = arith.addf %125, %126 : vector<2x32xf32>
    %cst_74 = arith.constant dense<0.000000e+00> : vector<2x128xf32>
    %128 = tpu.matmul %126, %111, %cst_74 {dimension_numbers = #tpu.dot_dimension_numbers<[1], [0], [0], [1], [0, 0, 1, 1], [], []>} : vector<2x32xf32>, vector<32x128xf32>, vector<2x128xf32> -> vector<2x128xf32>
    %cst_75 = arith.constant dense<0.000000e+00> : vector<2x128xf32>
    %129 = tpu.matmul %118, %112, %cst_75 {dimension_numbers = #tpu.dot_dimension_numbers<[1], [0], [0], [1], [0, 0, 1, 1], [], []>} : vector<2x32xf32>, vector<32x128xf32>, vector<2x128xf32> -> vector<2x128xf32>
    %130 = arith.addf %128, %129 : vector<2x128xf32>
    %131 = vector.broadcast %113 : vector<1x128xf32> to vector<2x128xf32>
    %132 = arith.addf %130, %131 : vector<2x128xf32>
    %133 = math.tanh %132 : vector<2x128xf32>
    %134 = arith.negf %132 : vector<2x128xf32>
    %135 = math.exp %134 : vector<2x128xf32>
    %cst_76 = arith.constant 1.000000e+00 : f32
    %136 = vector.broadcast %cst_76 : f32 to vector<2x128xf32>
    %137 = arith.addf %136, %135 : vector<2x128xf32>
    %138 = arith.divf %136, %137 : vector<2x128xf32>
    %139 = arith.select %110, %133, %138 : vector<2x128xi1>, vector<2x128xf32>
    %140 = vector.extract_strided_slice %139 {offsets = [0, 0], sizes = [2, 32], strides = [1, 1]} : vector<2x128xf32> to vector<2x32xf32>
    %141 = vector.extract_strided_slice %139 {offsets = [0, 32], sizes = [2, 32], strides = [1, 1]} : vector<2x128xf32> to vector<2x32xf32>
    %142 = vector.extract_strided_slice %139 {offsets = [0, 64], sizes = [2, 32], strides = [1, 1]} : vector<2x128xf32> to vector<2x32xf32>
    %143 = vector.extract_strided_slice %139 {offsets = [0, 96], sizes = [2, 32], strides = [1, 1]} : vector<2x128xf32> to vector<2x32xf32>
    %144 = arith.mulf %141, %120 : vector<2x32xf32>
    %145 = arith.mulf %140, %142 : vector<2x32xf32>
    %146 = arith.addf %144, %145 : vector<2x32xf32>
    %147 = math.tanh %146 : vector<2x32xf32>
    %148 = arith.mulf %143, %147 : vector<2x32xf32>
    %cst_77 = arith.constant dense<0.000000e+00> : vector<2x128xf32>
    %149 = tpu.matmul %148, %114, %cst_77 {dimension_numbers = #tpu.dot_dimension_numbers<[1], [0], [0], [1], [0, 0, 1, 1], [], []>} : vector<2x32xf32>, vector<32x128xf32>, vector<2x128xf32> -> vector<2x128xf32>
    %cst_78 = arith.constant dense<0.000000e+00> : vector<2x128xf32>
    %150 = tpu.matmul %122, %115, %cst_78 {dimension_numbers = #tpu.dot_dimension_numbers<[1], [0], [0], [1], [0, 0, 1, 1], [], []>} : vector<2x32xf32>, vector<32x128xf32>, vector<2x128xf32> -> vector<2x128xf32>
    %151 = arith.addf %149, %150 : vector<2x128xf32>
    %152 = vector.broadcast %116 : vector<1x128xf32> to vector<2x128xf32>
    %153 = arith.addf %151, %152 : vector<2x128xf32>
    %154 = math.tanh %153 : vector<2x128xf32>
    %155 = arith.negf %153 : vector<2x128xf32>
    %156 = math.exp %155 : vector<2x128xf32>
    %cst_79 = arith.constant 1.000000e+00 : f32
    %157 = vector.broadcast %cst_79 : f32 to vector<2x128xf32>
    %158 = arith.addf %157, %156 : vector<2x128xf32>
    %159 = arith.divf %157, %158 : vector<2x128xf32>
    %160 = arith.select %110, %154, %159 : vector<2x128xi1>, vector<2x128xf32>
    %161 = vector.extract_strided_slice %160 {offsets = [0, 0], sizes = [2, 32], strides = [1, 1]} : vector<2x128xf32> to vector<2x32xf32>
    %162 = vector.extract_strided_slice %160 {offsets = [0, 32], sizes = [2, 32], strides = [1, 1]} : vector<2x128xf32> to vector<2x32xf32>
    %163 = vector.extract_strided_slice %160 {offsets = [0, 64], sizes = [2, 32], strides = [1, 1]} : vector<2x128xf32> to vector<2x32xf32>
    %164 = vector.extract_strided_slice %160 {offsets = [0, 96], sizes = [2, 32], strides = [1, 1]} : vector<2x128xf32> to vector<2x32xf32>
    %165 = arith.mulf %162, %124 : vector<2x32xf32>
    %166 = arith.mulf %161, %163 : vector<2x32xf32>
    %167 = arith.addf %165, %166 : vector<2x32xf32>
    %168 = math.tanh %167 : vector<2x32xf32>
    %169 = arith.mulf %164, %168 : vector<2x32xf32>
    %170 = vector.extract_strided_slice %104 {offsets = [2, 0], sizes = [2, 32], strides = [1, 1]} : vector<16x32xf32> to vector<2x32xf32>
    %171 = arith.addf %127, %170 : vector<2x32xf32>
    %cst_80 = arith.constant dense<0.000000e+00> : vector<2x128xf32>
    %172 = tpu.matmul %170, %111, %cst_80 {dimension_numbers = #tpu.dot_dimension_numbers<[1], [0], [0], [1], [0, 0, 1, 1], [], []>} : vector<2x32xf32>, vector<32x128xf32>, vector<2x128xf32> -> vector<2x128xf32>
    %cst_81 = arith.constant dense<0.000000e+00> : vector<2x128xf32>
    %173 = tpu.matmul %148, %112, %cst_81 {dimension_numbers = #tpu.dot_dimension_numbers<[1], [0], [0], [1], [0, 0, 1, 1], [], []>} : vector<2x32xf32>, vector<32x128xf32>, vector<2x128xf32> -> vector<2x128xf32>
    %174 = arith.addf %172, %173 : vector<2x128xf32>
    %175 = vector.broadcast %113 : vector<1x128xf32> to vector<2x128xf32>
    %176 = arith.addf %174, %175 : vector<2x128xf32>
    %177 = math.tanh %176 : vector<2x128xf32>
    %178 = arith.negf %176 : vector<2x128xf32>
    %179 = math.exp %178 : vector<2x128xf32>
    %cst_82 = arith.constant 1.000000e+00 : f32
    %180 = vector.broadcast %cst_82 : f32 to vector<2x128xf32>
    %181 = arith.addf %180, %179 : vector<2x128xf32>
    %182 = arith.divf %180, %181 : vector<2x128xf32>
    %183 = arith.select %110, %177, %182 : vector<2x128xi1>, vector<2x128xf32>
    %184 = vector.extract_strided_slice %183 {offsets = [0, 0], sizes = [2, 32], strides = [1, 1]} : vector<2x128xf32> to vector<2x32xf32>
    %185 = vector.extract_strided_slice %183 {offsets = [0, 32], sizes = [2, 32], strides = [1, 1]} : vector<2x128xf32> to vector<2x32xf32>
    %186 = vector.extract_strided_slice %183 {offsets = [0, 64], sizes = [2, 32], strides = [1, 1]} : vector<2x128xf32> to vector<2x32xf32>
    %187 = vector.extract_strided_slice %183 {offsets = [0, 96], sizes = [2, 32], strides = [1, 1]} : vector<2x128xf32> to vector<2x32xf32>
    %188 = arith.mulf %185, %146 : vector<2x32xf32>
    %189 = arith.mulf %184, %186 : vector<2x32xf32>
    %190 = arith.addf %188, %189 : vector<2x32xf32>
    %191 = math.tanh %190 : vector<2x32xf32>
    %192 = arith.mulf %187, %191 : vector<2x32xf32>
    %cst_83 = arith.constant dense<0.000000e+00> : vector<2x128xf32>
    %193 = tpu.matmul %192, %114, %cst_83 {dimension_numbers = #tpu.dot_dimension_numbers<[1], [0], [0], [1], [0, 0, 1, 1], [], []>} : vector<2x32xf32>, vector<32x128xf32>, vector<2x128xf32> -> vector<2x128xf32>
    %cst_84 = arith.constant dense<0.000000e+00> : vector<2x128xf32>
    %194 = tpu.matmul %169, %115, %cst_84 {dimension_numbers = #tpu.dot_dimension_numbers<[1], [0], [0], [1], [0, 0, 1, 1], [], []>} : vector<2x32xf32>, vector<32x128xf32>, vector<2x128xf32> -> vector<2x128xf32>
    %195 = arith.addf %193, %194 : vector<2x128xf32>
    %196 = vector.broadcast %116 : vector<1x128xf32> to vector<2x128xf32>
    %197 = arith.addf %195, %196 : vector<2x128xf32>
    %198 = math.tanh %197 : vector<2x128xf32>
    %199 = arith.negf %197 : vector<2x128xf32>
    %200 = math.exp %199 : vector<2x128xf32>
    %cst_85 = arith.constant 1.000000e+00 : f32
    %201 = vector.broadcast %cst_85 : f32 to vector<2x128xf32>
    %202 = arith.addf %201, %200 : vector<2x128xf32>
    %203 = arith.divf %201, %202 : vector<2x128xf32>
    %204 = arith.select %110, %198, %203 : vector<2x128xi1>, vector<2x128xf32>
    %205 = vector.extract_strided_slice %204 {offsets = [0, 0], sizes = [2, 32], strides = [1, 1]} : vector<2x128xf32> to vector<2x32xf32>
    %206 = vector.extract_strided_slice %204 {offsets = [0, 32], sizes = [2, 32], strides = [1, 1]} : vector<2x128xf32> to vector<2x32xf32>
    %207 = vector.extract_strided_slice %204 {offsets = [0, 64], sizes = [2, 32], strides = [1, 1]} : vector<2x128xf32> to vector<2x32xf32>
    %208 = vector.extract_strided_slice %204 {offsets = [0, 96], sizes = [2, 32], strides = [1, 1]} : vector<2x128xf32> to vector<2x32xf32>
    %209 = arith.mulf %206, %167 : vector<2x32xf32>
    %210 = arith.mulf %205, %207 : vector<2x32xf32>
    %211 = arith.addf %209, %210 : vector<2x32xf32>
    %212 = math.tanh %211 : vector<2x32xf32>
    %213 = arith.mulf %208, %212 : vector<2x32xf32>
    %214 = vector.extract_strided_slice %104 {offsets = [4, 0], sizes = [2, 32], strides = [1, 1]} : vector<16x32xf32> to vector<2x32xf32>
    %215 = arith.addf %171, %214 : vector<2x32xf32>
    %cst_86 = arith.constant dense<0.000000e+00> : vector<2x128xf32>
    %216 = tpu.matmul %214, %111, %cst_86 {dimension_numbers = #tpu.dot_dimension_numbers<[1], [0], [0], [1], [0, 0, 1, 1], [], []>} : vector<2x32xf32>, vector<32x128xf32>, vector<2x128xf32> -> vector<2x128xf32>
    %cst_87 = arith.constant dense<0.000000e+00> : vector<2x128xf32>
    %217 = tpu.matmul %192, %112, %cst_87 {dimension_numbers = #tpu.dot_dimension_numbers<[1], [0], [0], [1], [0, 0, 1, 1], [], []>} : vector<2x32xf32>, vector<32x128xf32>, vector<2x128xf32> -> vector<2x128xf32>
    %218 = arith.addf %216, %217 : vector<2x128xf32>
    %219 = vector.broadcast %113 : vector<1x128xf32> to vector<2x128xf32>
    %220 = arith.addf %218, %219 : vector<2x128xf32>
    %221 = math.tanh %220 : vector<2x128xf32>
    %222 = arith.negf %220 : vector<2x128xf32>
    %223 = math.exp %222 : vector<2x128xf32>
    %cst_88 = arith.constant 1.000000e+00 : f32
    %224 = vector.broadcast %cst_88 : f32 to vector<2x128xf32>
    %225 = arith.addf %224, %223 : vector<2x128xf32>
    %226 = arith.divf %224, %225 : vector<2x128xf32>
    %227 = arith.select %110, %221, %226 : vector<2x128xi1>, vector<2x128xf32>
    %228 = vector.extract_strided_slice %227 {offsets = [0, 0], sizes = [2, 32], strides = [1, 1]} : vector<2x128xf32> to vector<2x32xf32>
    %229 = vector.extract_strided_slice %227 {offsets = [0, 32], sizes = [2, 32], strides = [1, 1]} : vector<2x128xf32> to vector<2x32xf32>
    %230 = vector.extract_strided_slice %227 {offsets = [0, 64], sizes = [2, 32], strides = [1, 1]} : vector<2x128xf32> to vector<2x32xf32>
    %231 = vector.extract_strided_slice %227 {offsets = [0, 96], sizes = [2, 32], strides = [1, 1]} : vector<2x128xf32> to vector<2x32xf32>
    %232 = arith.mulf %229, %190 : vector<2x32xf32>
    %233 = arith.mulf %228, %230 : vector<2x32xf32>
    %234 = arith.addf %232, %233 : vector<2x32xf32>
    %235 = math.tanh %234 : vector<2x32xf32>
    %236 = arith.mulf %231, %235 : vector<2x32xf32>
    %cst_89 = arith.constant dense<0.000000e+00> : vector<2x128xf32>
    %237 = tpu.matmul %236, %114, %cst_89 {dimension_numbers = #tpu.dot_dimension_numbers<[1], [0], [0], [1], [0, 0, 1, 1], [], []>} : vector<2x32xf32>, vector<32x128xf32>, vector<2x128xf32> -> vector<2x128xf32>
    %cst_90 = arith.constant dense<0.000000e+00> : vector<2x128xf32>
    %238 = tpu.matmul %213, %115, %cst_90 {dimension_numbers = #tpu.dot_dimension_numbers<[1], [0], [0], [1], [0, 0, 1, 1], [], []>} : vector<2x32xf32>, vector<32x128xf32>, vector<2x128xf32> -> vector<2x128xf32>
    %239 = arith.addf %237, %238 : vector<2x128xf32>
    %240 = vector.broadcast %116 : vector<1x128xf32> to vector<2x128xf32>
    %241 = arith.addf %239, %240 : vector<2x128xf32>
    %242 = math.tanh %241 : vector<2x128xf32>
    %243 = arith.negf %241 : vector<2x128xf32>
    %244 = math.exp %243 : vector<2x128xf32>
    %cst_91 = arith.constant 1.000000e+00 : f32
    %245 = vector.broadcast %cst_91 : f32 to vector<2x128xf32>
    %246 = arith.addf %245, %244 : vector<2x128xf32>
    %247 = arith.divf %245, %246 : vector<2x128xf32>
    %248 = arith.select %110, %242, %247 : vector<2x128xi1>, vector<2x128xf32>
    %249 = vector.extract_strided_slice %248 {offsets = [0, 0], sizes = [2, 32], strides = [1, 1]} : vector<2x128xf32> to vector<2x32xf32>
    %250 = vector.extract_strided_slice %248 {offsets = [0, 32], sizes = [2, 32], strides = [1, 1]} : vector<2x128xf32> to vector<2x32xf32>
    %251 = vector.extract_strided_slice %248 {offsets = [0, 64], sizes = [2, 32], strides = [1, 1]} : vector<2x128xf32> to vector<2x32xf32>
    %252 = vector.extract_strided_slice %248 {offsets = [0, 96], sizes = [2, 32], strides = [1, 1]} : vector<2x128xf32> to vector<2x32xf32>
    %253 = arith.mulf %250, %211 : vector<2x32xf32>
    %254 = arith.mulf %249, %251 : vector<2x32xf32>
    %255 = arith.addf %253, %254 : vector<2x32xf32>
    %256 = math.tanh %255 : vector<2x32xf32>
    %257 = arith.mulf %252, %256 : vector<2x32xf32>
    %258 = vector.extract_strided_slice %104 {offsets = [6, 0], sizes = [2, 32], strides = [1, 1]} : vector<16x32xf32> to vector<2x32xf32>
    %259 = arith.addf %215, %258 : vector<2x32xf32>
    %cst_92 = arith.constant dense<0.000000e+00> : vector<2x128xf32>
    %260 = tpu.matmul %258, %111, %cst_92 {dimension_numbers = #tpu.dot_dimension_numbers<[1], [0], [0], [1], [0, 0, 1, 1], [], []>} : vector<2x32xf32>, vector<32x128xf32>, vector<2x128xf32> -> vector<2x128xf32>
    %cst_93 = arith.constant dense<0.000000e+00> : vector<2x128xf32>
    %261 = tpu.matmul %236, %112, %cst_93 {dimension_numbers = #tpu.dot_dimension_numbers<[1], [0], [0], [1], [0, 0, 1, 1], [], []>} : vector<2x32xf32>, vector<32x128xf32>, vector<2x128xf32> -> vector<2x128xf32>
    %262 = arith.addf %260, %261 : vector<2x128xf32>
    %263 = vector.broadcast %113 : vector<1x128xf32> to vector<2x128xf32>
    %264 = arith.addf %262, %263 : vector<2x128xf32>
    %265 = math.tanh %264 : vector<2x128xf32>
    %266 = arith.negf %264 : vector<2x128xf32>
    %267 = math.exp %266 : vector<2x128xf32>
    %cst_94 = arith.constant 1.000000e+00 : f32
    %268 = vector.broadcast %cst_94 : f32 to vector<2x128xf32>
    %269 = arith.addf %268, %267 : vector<2x128xf32>
    %270 = arith.divf %268, %269 : vector<2x128xf32>
    %271 = arith.select %110, %265, %270 : vector<2x128xi1>, vector<2x128xf32>
    %272 = vector.extract_strided_slice %271 {offsets = [0, 0], sizes = [2, 32], strides = [1, 1]} : vector<2x128xf32> to vector<2x32xf32>
    %273 = vector.extract_strided_slice %271 {offsets = [0, 32], sizes = [2, 32], strides = [1, 1]} : vector<2x128xf32> to vector<2x32xf32>
    %274 = vector.extract_strided_slice %271 {offsets = [0, 64], sizes = [2, 32], strides = [1, 1]} : vector<2x128xf32> to vector<2x32xf32>
    %275 = vector.extract_strided_slice %271 {offsets = [0, 96], sizes = [2, 32], strides = [1, 1]} : vector<2x128xf32> to vector<2x32xf32>
    %276 = arith.mulf %273, %234 : vector<2x32xf32>
    %277 = arith.mulf %272, %274 : vector<2x32xf32>
    %278 = arith.addf %276, %277 : vector<2x32xf32>
    %279 = math.tanh %278 : vector<2x32xf32>
    %280 = arith.mulf %275, %279 : vector<2x32xf32>
    %cst_95 = arith.constant dense<0.000000e+00> : vector<2x128xf32>
    %281 = tpu.matmul %280, %114, %cst_95 {dimension_numbers = #tpu.dot_dimension_numbers<[1], [0], [0], [1], [0, 0, 1, 1], [], []>} : vector<2x32xf32>, vector<32x128xf32>, vector<2x128xf32> -> vector<2x128xf32>
    %cst_96 = arith.constant dense<0.000000e+00> : vector<2x128xf32>
    %282 = tpu.matmul %257, %115, %cst_96 {dimension_numbers = #tpu.dot_dimension_numbers<[1], [0], [0], [1], [0, 0, 1, 1], [], []>} : vector<2x32xf32>, vector<32x128xf32>, vector<2x128xf32> -> vector<2x128xf32>
    %283 = arith.addf %281, %282 : vector<2x128xf32>
    %284 = vector.broadcast %116 : vector<1x128xf32> to vector<2x128xf32>
    %285 = arith.addf %283, %284 : vector<2x128xf32>
    %286 = math.tanh %285 : vector<2x128xf32>
    %287 = arith.negf %285 : vector<2x128xf32>
    %288 = math.exp %287 : vector<2x128xf32>
    %cst_97 = arith.constant 1.000000e+00 : f32
    %289 = vector.broadcast %cst_97 : f32 to vector<2x128xf32>
    %290 = arith.addf %289, %288 : vector<2x128xf32>
    %291 = arith.divf %289, %290 : vector<2x128xf32>
    %292 = arith.select %110, %286, %291 : vector<2x128xi1>, vector<2x128xf32>
    %293 = vector.extract_strided_slice %292 {offsets = [0, 0], sizes = [2, 32], strides = [1, 1]} : vector<2x128xf32> to vector<2x32xf32>
    %294 = vector.extract_strided_slice %292 {offsets = [0, 32], sizes = [2, 32], strides = [1, 1]} : vector<2x128xf32> to vector<2x32xf32>
    %295 = vector.extract_strided_slice %292 {offsets = [0, 64], sizes = [2, 32], strides = [1, 1]} : vector<2x128xf32> to vector<2x32xf32>
    %296 = vector.extract_strided_slice %292 {offsets = [0, 96], sizes = [2, 32], strides = [1, 1]} : vector<2x128xf32> to vector<2x32xf32>
    %297 = arith.mulf %294, %255 : vector<2x32xf32>
    %298 = arith.mulf %293, %295 : vector<2x32xf32>
    %299 = arith.addf %297, %298 : vector<2x32xf32>
    %300 = math.tanh %299 : vector<2x32xf32>
    %301 = arith.mulf %296, %300 : vector<2x32xf32>
    %302 = vector.extract_strided_slice %104 {offsets = [8, 0], sizes = [2, 32], strides = [1, 1]} : vector<16x32xf32> to vector<2x32xf32>
    %303 = arith.addf %259, %302 : vector<2x32xf32>
    %cst_98 = arith.constant dense<0.000000e+00> : vector<2x128xf32>
    %304 = tpu.matmul %302, %111, %cst_98 {dimension_numbers = #tpu.dot_dimension_numbers<[1], [0], [0], [1], [0, 0, 1, 1], [], []>} : vector<2x32xf32>, vector<32x128xf32>, vector<2x128xf32> -> vector<2x128xf32>
    %cst_99 = arith.constant dense<0.000000e+00> : vector<2x128xf32>
    %305 = tpu.matmul %280, %112, %cst_99 {dimension_numbers = #tpu.dot_dimension_numbers<[1], [0], [0], [1], [0, 0, 1, 1], [], []>} : vector<2x32xf32>, vector<32x128xf32>, vector<2x128xf32> -> vector<2x128xf32>
    %306 = arith.addf %304, %305 : vector<2x128xf32>
    %307 = vector.broadcast %113 : vector<1x128xf32> to vector<2x128xf32>
    %308 = arith.addf %306, %307 : vector<2x128xf32>
    %309 = math.tanh %308 : vector<2x128xf32>
    %310 = arith.negf %308 : vector<2x128xf32>
    %311 = math.exp %310 : vector<2x128xf32>
    %cst_100 = arith.constant 1.000000e+00 : f32
    %312 = vector.broadcast %cst_100 : f32 to vector<2x128xf32>
    %313 = arith.addf %312, %311 : vector<2x128xf32>
    %314 = arith.divf %312, %313 : vector<2x128xf32>
    %315 = arith.select %110, %309, %314 : vector<2x128xi1>, vector<2x128xf32>
    %316 = vector.extract_strided_slice %315 {offsets = [0, 0], sizes = [2, 32], strides = [1, 1]} : vector<2x128xf32> to vector<2x32xf32>
    %317 = vector.extract_strided_slice %315 {offsets = [0, 32], sizes = [2, 32], strides = [1, 1]} : vector<2x128xf32> to vector<2x32xf32>
    %318 = vector.extract_strided_slice %315 {offsets = [0, 64], sizes = [2, 32], strides = [1, 1]} : vector<2x128xf32> to vector<2x32xf32>
    %319 = vector.extract_strided_slice %315 {offsets = [0, 96], sizes = [2, 32], strides = [1, 1]} : vector<2x128xf32> to vector<2x32xf32>
    %320 = arith.mulf %317, %278 : vector<2x32xf32>
    %321 = arith.mulf %316, %318 : vector<2x32xf32>
    %322 = arith.addf %320, %321 : vector<2x32xf32>
    %323 = math.tanh %322 : vector<2x32xf32>
    %324 = arith.mulf %319, %323 : vector<2x32xf32>
    %cst_101 = arith.constant dense<0.000000e+00> : vector<2x128xf32>
    %325 = tpu.matmul %324, %114, %cst_101 {dimension_numbers = #tpu.dot_dimension_numbers<[1], [0], [0], [1], [0, 0, 1, 1], [], []>} : vector<2x32xf32>, vector<32x128xf32>, vector<2x128xf32> -> vector<2x128xf32>
    %cst_102 = arith.constant dense<0.000000e+00> : vector<2x128xf32>
    %326 = tpu.matmul %301, %115, %cst_102 {dimension_numbers = #tpu.dot_dimension_numbers<[1], [0], [0], [1], [0, 0, 1, 1], [], []>} : vector<2x32xf32>, vector<32x128xf32>, vector<2x128xf32> -> vector<2x128xf32>
    %327 = arith.addf %325, %326 : vector<2x128xf32>
    %328 = vector.broadcast %116 : vector<1x128xf32> to vector<2x128xf32>
    %329 = arith.addf %327, %328 : vector<2x128xf32>
    %330 = math.tanh %329 : vector<2x128xf32>
    %331 = arith.negf %329 : vector<2x128xf32>
    %332 = math.exp %331 : vector<2x128xf32>
    %cst_103 = arith.constant 1.000000e+00 : f32
    %333 = vector.broadcast %cst_103 : f32 to vector<2x128xf32>
    %334 = arith.addf %333, %332 : vector<2x128xf32>
    %335 = arith.divf %333, %334 : vector<2x128xf32>
    %336 = arith.select %110, %330, %335 : vector<2x128xi1>, vector<2x128xf32>
    %337 = vector.extract_strided_slice %336 {offsets = [0, 0], sizes = [2, 32], strides = [1, 1]} : vector<2x128xf32> to vector<2x32xf32>
    %338 = vector.extract_strided_slice %336 {offsets = [0, 32], sizes = [2, 32], strides = [1, 1]} : vector<2x128xf32> to vector<2x32xf32>
    %339 = vector.extract_strided_slice %336 {offsets = [0, 64], sizes = [2, 32], strides = [1, 1]} : vector<2x128xf32> to vector<2x32xf32>
    %340 = vector.extract_strided_slice %336 {offsets = [0, 96], sizes = [2, 32], strides = [1, 1]} : vector<2x128xf32> to vector<2x32xf32>
    %341 = arith.mulf %338, %299 : vector<2x32xf32>
    %342 = arith.mulf %337, %339 : vector<2x32xf32>
    %343 = arith.addf %341, %342 : vector<2x32xf32>
    %344 = math.tanh %343 : vector<2x32xf32>
    %345 = arith.mulf %340, %344 : vector<2x32xf32>
    %346 = vector.extract_strided_slice %104 {offsets = [10, 0], sizes = [2, 32], strides = [1, 1]} : vector<16x32xf32> to vector<2x32xf32>
    %347 = arith.addf %303, %346 : vector<2x32xf32>
    %cst_104 = arith.constant dense<0.000000e+00> : vector<2x128xf32>
    %348 = tpu.matmul %346, %111, %cst_104 {dimension_numbers = #tpu.dot_dimension_numbers<[1], [0], [0], [1], [0, 0, 1, 1], [], []>} : vector<2x32xf32>, vector<32x128xf32>, vector<2x128xf32> -> vector<2x128xf32>
    %cst_105 = arith.constant dense<0.000000e+00> : vector<2x128xf32>
    %349 = tpu.matmul %324, %112, %cst_105 {dimension_numbers = #tpu.dot_dimension_numbers<[1], [0], [0], [1], [0, 0, 1, 1], [], []>} : vector<2x32xf32>, vector<32x128xf32>, vector<2x128xf32> -> vector<2x128xf32>
    %350 = arith.addf %348, %349 : vector<2x128xf32>
    %351 = vector.broadcast %113 : vector<1x128xf32> to vector<2x128xf32>
    %352 = arith.addf %350, %351 : vector<2x128xf32>
    %353 = math.tanh %352 : vector<2x128xf32>
    %354 = arith.negf %352 : vector<2x128xf32>
    %355 = math.exp %354 : vector<2x128xf32>
    %cst_106 = arith.constant 1.000000e+00 : f32
    %356 = vector.broadcast %cst_106 : f32 to vector<2x128xf32>
    %357 = arith.addf %356, %355 : vector<2x128xf32>
    %358 = arith.divf %356, %357 : vector<2x128xf32>
    %359 = arith.select %110, %353, %358 : vector<2x128xi1>, vector<2x128xf32>
    %360 = vector.extract_strided_slice %359 {offsets = [0, 0], sizes = [2, 32], strides = [1, 1]} : vector<2x128xf32> to vector<2x32xf32>
    %361 = vector.extract_strided_slice %359 {offsets = [0, 32], sizes = [2, 32], strides = [1, 1]} : vector<2x128xf32> to vector<2x32xf32>
    %362 = vector.extract_strided_slice %359 {offsets = [0, 64], sizes = [2, 32], strides = [1, 1]} : vector<2x128xf32> to vector<2x32xf32>
    %363 = vector.extract_strided_slice %359 {offsets = [0, 96], sizes = [2, 32], strides = [1, 1]} : vector<2x128xf32> to vector<2x32xf32>
    %364 = arith.mulf %361, %322 : vector<2x32xf32>
    %365 = arith.mulf %360, %362 : vector<2x32xf32>
    %366 = arith.addf %364, %365 : vector<2x32xf32>
    %367 = math.tanh %366 : vector<2x32xf32>
    %368 = arith.mulf %363, %367 : vector<2x32xf32>
    %cst_107 = arith.constant dense<0.000000e+00> : vector<2x128xf32>
    %369 = tpu.matmul %368, %114, %cst_107 {dimension_numbers = #tpu.dot_dimension_numbers<[1], [0], [0], [1], [0, 0, 1, 1], [], []>} : vector<2x32xf32>, vector<32x128xf32>, vector<2x128xf32> -> vector<2x128xf32>
    %cst_108 = arith.constant dense<0.000000e+00> : vector<2x128xf32>
    %370 = tpu.matmul %345, %115, %cst_108 {dimension_numbers = #tpu.dot_dimension_numbers<[1], [0], [0], [1], [0, 0, 1, 1], [], []>} : vector<2x32xf32>, vector<32x128xf32>, vector<2x128xf32> -> vector<2x128xf32>
    %371 = arith.addf %369, %370 : vector<2x128xf32>
    %372 = vector.broadcast %116 : vector<1x128xf32> to vector<2x128xf32>
    %373 = arith.addf %371, %372 : vector<2x128xf32>
    %374 = math.tanh %373 : vector<2x128xf32>
    %375 = arith.negf %373 : vector<2x128xf32>
    %376 = math.exp %375 : vector<2x128xf32>
    %cst_109 = arith.constant 1.000000e+00 : f32
    %377 = vector.broadcast %cst_109 : f32 to vector<2x128xf32>
    %378 = arith.addf %377, %376 : vector<2x128xf32>
    %379 = arith.divf %377, %378 : vector<2x128xf32>
    %380 = arith.select %110, %374, %379 : vector<2x128xi1>, vector<2x128xf32>
    %381 = vector.extract_strided_slice %380 {offsets = [0, 0], sizes = [2, 32], strides = [1, 1]} : vector<2x128xf32> to vector<2x32xf32>
    %382 = vector.extract_strided_slice %380 {offsets = [0, 32], sizes = [2, 32], strides = [1, 1]} : vector<2x128xf32> to vector<2x32xf32>
    %383 = vector.extract_strided_slice %380 {offsets = [0, 64], sizes = [2, 32], strides = [1, 1]} : vector<2x128xf32> to vector<2x32xf32>
    %384 = vector.extract_strided_slice %380 {offsets = [0, 96], sizes = [2, 32], strides = [1, 1]} : vector<2x128xf32> to vector<2x32xf32>
    %385 = arith.mulf %382, %343 : vector<2x32xf32>
    %386 = arith.mulf %381, %383 : vector<2x32xf32>
    %387 = arith.addf %385, %386 : vector<2x32xf32>
    %388 = math.tanh %387 : vector<2x32xf32>
    %389 = arith.mulf %384, %388 : vector<2x32xf32>
    %390 = vector.extract_strided_slice %104 {offsets = [12, 0], sizes = [2, 32], strides = [1, 1]} : vector<16x32xf32> to vector<2x32xf32>
    %391 = arith.addf %347, %390 : vector<2x32xf32>
    %cst_110 = arith.constant dense<0.000000e+00> : vector<2x128xf32>
    %392 = tpu.matmul %390, %111, %cst_110 {dimension_numbers = #tpu.dot_dimension_numbers<[1], [0], [0], [1], [0, 0, 1, 1], [], []>} : vector<2x32xf32>, vector<32x128xf32>, vector<2x128xf32> -> vector<2x128xf32>
    %cst_111 = arith.constant dense<0.000000e+00> : vector<2x128xf32>
    %393 = tpu.matmul %368, %112, %cst_111 {dimension_numbers = #tpu.dot_dimension_numbers<[1], [0], [0], [1], [0, 0, 1, 1], [], []>} : vector<2x32xf32>, vector<32x128xf32>, vector<2x128xf32> -> vector<2x128xf32>
    %394 = arith.addf %392, %393 : vector<2x128xf32>
    %395 = vector.broadcast %113 : vector<1x128xf32> to vector<2x128xf32>
    %396 = arith.addf %394, %395 : vector<2x128xf32>
    %397 = math.tanh %396 : vector<2x128xf32>
    %398 = arith.negf %396 : vector<2x128xf32>
    %399 = math.exp %398 : vector<2x128xf32>
    %cst_112 = arith.constant 1.000000e+00 : f32
    %400 = vector.broadcast %cst_112 : f32 to vector<2x128xf32>
    %401 = arith.addf %400, %399 : vector<2x128xf32>
    %402 = arith.divf %400, %401 : vector<2x128xf32>
    %403 = arith.select %110, %397, %402 : vector<2x128xi1>, vector<2x128xf32>
    %404 = vector.extract_strided_slice %403 {offsets = [0, 0], sizes = [2, 32], strides = [1, 1]} : vector<2x128xf32> to vector<2x32xf32>
    %405 = vector.extract_strided_slice %403 {offsets = [0, 32], sizes = [2, 32], strides = [1, 1]} : vector<2x128xf32> to vector<2x32xf32>
    %406 = vector.extract_strided_slice %403 {offsets = [0, 64], sizes = [2, 32], strides = [1, 1]} : vector<2x128xf32> to vector<2x32xf32>
    %407 = vector.extract_strided_slice %403 {offsets = [0, 96], sizes = [2, 32], strides = [1, 1]} : vector<2x128xf32> to vector<2x32xf32>
    %408 = arith.mulf %405, %366 : vector<2x32xf32>
    %409 = arith.mulf %404, %406 : vector<2x32xf32>
    %410 = arith.addf %408, %409 : vector<2x32xf32>
    %411 = math.tanh %410 : vector<2x32xf32>
    %412 = arith.mulf %407, %411 : vector<2x32xf32>
    %cst_113 = arith.constant dense<0.000000e+00> : vector<2x128xf32>
    %413 = tpu.matmul %412, %114, %cst_113 {dimension_numbers = #tpu.dot_dimension_numbers<[1], [0], [0], [1], [0, 0, 1, 1], [], []>} : vector<2x32xf32>, vector<32x128xf32>, vector<2x128xf32> -> vector<2x128xf32>
    %cst_114 = arith.constant dense<0.000000e+00> : vector<2x128xf32>
    %414 = tpu.matmul %389, %115, %cst_114 {dimension_numbers = #tpu.dot_dimension_numbers<[1], [0], [0], [1], [0, 0, 1, 1], [], []>} : vector<2x32xf32>, vector<32x128xf32>, vector<2x128xf32> -> vector<2x128xf32>
    %415 = arith.addf %413, %414 : vector<2x128xf32>
    %416 = vector.broadcast %116 : vector<1x128xf32> to vector<2x128xf32>
    %417 = arith.addf %415, %416 : vector<2x128xf32>
    %418 = math.tanh %417 : vector<2x128xf32>
    %419 = arith.negf %417 : vector<2x128xf32>
    %420 = math.exp %419 : vector<2x128xf32>
    %cst_115 = arith.constant 1.000000e+00 : f32
    %421 = vector.broadcast %cst_115 : f32 to vector<2x128xf32>
    %422 = arith.addf %421, %420 : vector<2x128xf32>
    %423 = arith.divf %421, %422 : vector<2x128xf32>
    %424 = arith.select %110, %418, %423 : vector<2x128xi1>, vector<2x128xf32>
    %425 = vector.extract_strided_slice %424 {offsets = [0, 0], sizes = [2, 32], strides = [1, 1]} : vector<2x128xf32> to vector<2x32xf32>
    %426 = vector.extract_strided_slice %424 {offsets = [0, 32], sizes = [2, 32], strides = [1, 1]} : vector<2x128xf32> to vector<2x32xf32>
    %427 = vector.extract_strided_slice %424 {offsets = [0, 64], sizes = [2, 32], strides = [1, 1]} : vector<2x128xf32> to vector<2x32xf32>
    %428 = vector.extract_strided_slice %424 {offsets = [0, 96], sizes = [2, 32], strides = [1, 1]} : vector<2x128xf32> to vector<2x32xf32>
    %429 = arith.mulf %426, %387 : vector<2x32xf32>
    %430 = arith.mulf %425, %427 : vector<2x32xf32>
    %431 = arith.addf %429, %430 : vector<2x32xf32>
    %432 = math.tanh %431 : vector<2x32xf32>
    %433 = arith.mulf %428, %432 : vector<2x32xf32>
    %434 = vector.extract_strided_slice %104 {offsets = [14, 0], sizes = [2, 32], strides = [1, 1]} : vector<16x32xf32> to vector<2x32xf32>
    %435 = arith.addf %391, %434 : vector<2x32xf32>
    %cst_116 = arith.constant dense<0.000000e+00> : vector<2x128xf32>
    %436 = tpu.matmul %434, %111, %cst_116 {dimension_numbers = #tpu.dot_dimension_numbers<[1], [0], [0], [1], [0, 0, 1, 1], [], []>} : vector<2x32xf32>, vector<32x128xf32>, vector<2x128xf32> -> vector<2x128xf32>
    %cst_117 = arith.constant dense<0.000000e+00> : vector<2x128xf32>
    %437 = tpu.matmul %412, %112, %cst_117 {dimension_numbers = #tpu.dot_dimension_numbers<[1], [0], [0], [1], [0, 0, 1, 1], [], []>} : vector<2x32xf32>, vector<32x128xf32>, vector<2x128xf32> -> vector<2x128xf32>
    %438 = arith.addf %436, %437 : vector<2x128xf32>
    %439 = vector.broadcast %113 : vector<1x128xf32> to vector<2x128xf32>
    %440 = arith.addf %438, %439 : vector<2x128xf32>
    %441 = math.tanh %440 : vector<2x128xf32>
    %442 = arith.negf %440 : vector<2x128xf32>
    %443 = math.exp %442 : vector<2x128xf32>
    %cst_118 = arith.constant 1.000000e+00 : f32
    %444 = vector.broadcast %cst_118 : f32 to vector<2x128xf32>
    %445 = arith.addf %444, %443 : vector<2x128xf32>
    %446 = arith.divf %444, %445 : vector<2x128xf32>
    %447 = arith.select %110, %441, %446 : vector<2x128xi1>, vector<2x128xf32>
    %448 = vector.extract_strided_slice %447 {offsets = [0, 0], sizes = [2, 32], strides = [1, 1]} : vector<2x128xf32> to vector<2x32xf32>
    %449 = vector.extract_strided_slice %447 {offsets = [0, 32], sizes = [2, 32], strides = [1, 1]} : vector<2x128xf32> to vector<2x32xf32>
    %450 = vector.extract_strided_slice %447 {offsets = [0, 64], sizes = [2, 32], strides = [1, 1]} : vector<2x128xf32> to vector<2x32xf32>
    %451 = vector.extract_strided_slice %447 {offsets = [0, 96], sizes = [2, 32], strides = [1, 1]} : vector<2x128xf32> to vector<2x32xf32>
    %452 = arith.mulf %449, %410 : vector<2x32xf32>
    %453 = arith.mulf %448, %450 : vector<2x32xf32>
    %454 = arith.addf %452, %453 : vector<2x32xf32>
    %455 = math.tanh %454 : vector<2x32xf32>
    %456 = arith.mulf %451, %455 : vector<2x32xf32>
    %cst_119 = arith.constant dense<0.000000e+00> : vector<2x128xf32>
    %457 = tpu.matmul %456, %114, %cst_119 {dimension_numbers = #tpu.dot_dimension_numbers<[1], [0], [0], [1], [0, 0, 1, 1], [], []>} : vector<2x32xf32>, vector<32x128xf32>, vector<2x128xf32> -> vector<2x128xf32>
    %cst_120 = arith.constant dense<0.000000e+00> : vector<2x128xf32>
    %458 = tpu.matmul %433, %115, %cst_120 {dimension_numbers = #tpu.dot_dimension_numbers<[1], [0], [0], [1], [0, 0, 1, 1], [], []>} : vector<2x32xf32>, vector<32x128xf32>, vector<2x128xf32> -> vector<2x128xf32>
    %459 = arith.addf %457, %458 : vector<2x128xf32>
    %460 = vector.broadcast %116 : vector<1x128xf32> to vector<2x128xf32>
    %461 = arith.addf %459, %460 : vector<2x128xf32>
    %462 = math.tanh %461 : vector<2x128xf32>
    %463 = arith.negf %461 : vector<2x128xf32>
    %464 = math.exp %463 : vector<2x128xf32>
    %cst_121 = arith.constant 1.000000e+00 : f32
    %465 = vector.broadcast %cst_121 : f32 to vector<2x128xf32>
    %466 = arith.addf %465, %464 : vector<2x128xf32>
    %467 = arith.divf %465, %466 : vector<2x128xf32>
    %468 = arith.select %110, %462, %467 : vector<2x128xi1>, vector<2x128xf32>
    %469 = vector.extract_strided_slice %468 {offsets = [0, 0], sizes = [2, 32], strides = [1, 1]} : vector<2x128xf32> to vector<2x32xf32>
    %470 = vector.extract_strided_slice %468 {offsets = [0, 32], sizes = [2, 32], strides = [1, 1]} : vector<2x128xf32> to vector<2x32xf32>
    %471 = vector.extract_strided_slice %468 {offsets = [0, 64], sizes = [2, 32], strides = [1, 1]} : vector<2x128xf32> to vector<2x32xf32>
    %472 = vector.extract_strided_slice %468 {offsets = [0, 96], sizes = [2, 32], strides = [1, 1]} : vector<2x128xf32> to vector<2x32xf32>
    %473 = arith.mulf %470, %431 : vector<2x32xf32>
    %474 = arith.mulf %469, %471 : vector<2x32xf32>
    %475 = arith.addf %473, %474 : vector<2x32xf32>
    %476 = math.tanh %475 : vector<2x32xf32>
    %477 = arith.mulf %472, %476 : vector<2x32xf32>
    %c0_122 = arith.constant 0 : index
    %c0_123 = arith.constant 0 : index
    %c0_124 = arith.constant 0 : index
    %478 = vector.load %arg26[%c0_122, %c0_123, %c0_124] : memref<2x2x32xf32, #tpu.memory_space<vmem>>, vector<1x2x32xf32>
    %479 = vector.shape_cast %478 : vector<1x2x32xf32> to vector<2x32xf32>
    %480 = vector.shape_cast %456 : vector<2x32xf32> to vector<1x2x32xf32>
    tpu.vector_store %arg26[%c0_122, %c0_123, %c0_124], %480 {strides = array<i32>} : memref<2x2x32xf32, #tpu.memory_space<vmem>>, vector<1x2x32xf32>,
    %c1_125 = arith.constant 1 : index
    %c0_126 = arith.constant 0 : index
    %c0_127 = arith.constant 0 : index
    %481 = vector.load %arg26[%c1_125, %c0_126, %c0_127] : memref<2x2x32xf32, #tpu.memory_space<vmem>>, vector<1x2x32xf32>
    %482 = vector.shape_cast %481 : vector<1x2x32xf32> to vector<2x32xf32>
    %483 = vector.shape_cast %477 : vector<2x32xf32> to vector<1x2x32xf32>
    tpu.vector_store %arg26[%c1_125, %c0_126, %c0_127], %483 {strides = array<i32>} : memref<2x2x32xf32, #tpu.memory_space<vmem>>, vector<1x2x32xf32>,
    %c0_128 = arith.constant 0 : index
    %c0_129 = arith.constant 0 : index
    %c0_130 = arith.constant 0 : index
    %484 = vector.load %arg27[%c0_128, %c0_129, %c0_130] : memref<2x2x32xf32, #tpu.memory_space<vmem>>, vector<1x2x32xf32>
    %485 = vector.shape_cast %484 : vector<1x2x32xf32> to vector<2x32xf32>
    %486 = vector.shape_cast %454 : vector<2x32xf32> to vector<1x2x32xf32>
    tpu.vector_store %arg27[%c0_128, %c0_129, %c0_130], %486 {strides = array<i32>} : memref<2x2x32xf32, #tpu.memory_space<vmem>>, vector<1x2x32xf32>,
    %c1_131 = arith.constant 1 : index
    %c0_132 = arith.constant 0 : index
    %c0_133 = arith.constant 0 : index
    %487 = vector.load %arg27[%c1_131, %c0_132, %c0_133] : memref<2x2x32xf32, #tpu.memory_space<vmem>>, vector<1x2x32xf32>
    %488 = vector.shape_cast %487 : vector<1x2x32xf32> to vector<2x32xf32>
    %489 = vector.shape_cast %475 : vector<2x32xf32> to vector<1x2x32xf32>
    tpu.vector_store %arg27[%c1_131, %c0_132, %c0_133], %489 {strides = array<i32>} : memref<2x2x32xf32, #tpu.memory_space<vmem>>, vector<1x2x32xf32>,
    %cst_134 = arith.constant 1.250000e-01 : f32
    %490 = vector.broadcast %cst_134 : f32 to vector<2x32xf32>
    %491 = arith.mulf %435, %490 : vector<2x32xf32>
    %c0_135 = arith.constant 0 : index
    %c0_136 = arith.constant 0 : index
    %492 = vector.load %arg22[%c0_135, %c0_136] : memref<32x32xf32, #tpu.memory_space<vmem>>, vector<32x32xf32>
    %cst_137 = arith.constant dense<0.000000e+00> : vector<2x32xf32>
    %493 = tpu.matmul %491, %492, %cst_137 {dimension_numbers = #tpu.dot_dimension_numbers<[1], [0], [0], [1], [0, 0, 1, 1], [], []>} : vector<2x32xf32>, vector<32x32xf32>, vector<2x32xf32> -> vector<2x32xf32>
    %c0_138 = arith.constant 0 : index
    %c0_139 = arith.constant 0 : index
    %494 = vector.load %arg23[%c0_138, %c0_139] : memref<32x32xf32, #tpu.memory_space<vmem>>, vector<32x32xf32>
    %cst_140 = arith.constant dense<0.000000e+00> : vector<2x32xf32>
    %495 = tpu.matmul %477, %494, %cst_140 {dimension_numbers = #tpu.dot_dimension_numbers<[1], [0], [0], [1], [0, 0, 1, 1], [], []>} : vector<2x32xf32>, vector<32x32xf32>, vector<2x32xf32> -> vector<2x32xf32>
    %496 = arith.addf %493, %495 : vector<2x32xf32>
    %c0_141 = arith.constant 0 : index
    %c0_142 = arith.constant 0 : index
    %497 = vector.load %arg24[%c0_141, %c0_142] : memref<1x32xf32, #tpu.memory_space<vmem>>, vector<1x32xf32>
    %498 = vector.broadcast %497 : vector<1x32xf32> to vector<2x32xf32>
    %499 = arith.addf %496, %498 : vector<2x32xf32>
    %cst_143 = arith.constant 0.000000e+00 : f32
    %500 = vector.broadcast %cst_143 : f32 to vector<2x32xf32>
    %501 = arith.maximumf %499, %500 : vector<2x32xf32>
    %c0_144 = arith.constant 0 : index
    %c0_145 = arith.constant 0 : index
    %502 = vector.load %arg25[%c0_144, %c0_145] : memref<2x32xf32, #tpu.memory_space<vmem>>, vector<2x32xf32>
    tpu.vector_store %arg25[%c0_144, %c0_145], %501 {strides = array<i32>} : memref<2x32xf32, #tpu.memory_space<vmem>>, vector<2x32xf32>,
    return
  }
}

</mosaic_0001>

<bundles_post_ra>
// kernel: chatbot_forward.1
= control target key start
LH: loop header
LB: loop body
LE: loop exit
PB: predicated region body
PF: predicated region fallthrough
CT: control target
= control target key end

     0   :  { %s5964_s0 = inlined_call_operand.vmem [shape: f32[16,32], index: 0, kind: input, shape index: {}]   ;;  %s5965_s1 = inlined_call_operand.vmem [shape: f32[16,16], index: 1, kind: input, shape index: {}]   ;;  %s5966_s2 = inlined_call_operand.vmem [shape: f32[32,96], index: 2, kind: input, shape index: {}]   ;;  %s5967_s3 = inlined_call_operand.vmem [shape: f32[1,96], index: 3, kind: input, shape index: {}]   ;;  %s5968_s4 = inlined_call_operand.vmem [shape: f32[32,32], index: 4, kind: input, shape index: {}]   ;;  %s5969_s5 = inlined_call_operand.vmem [shape: f32[1,32], index: 5, kind: input, shape index: {}]   ;;  %s5970_s6 = inlined_call_operand.vmem [shape: f32[1,32], index: 6, kind: input, shape index: {}]   ;;  %s5971_s7 = inlined_call_operand.vmem [shape: f32[1,32], index: 7, kind: input, shape index: {}]   ;;  %s5972_s8 = inlined_call_operand.vmem [shape: f32[1,32], index: 8, kind: input, shape index: {}]   ;;  %s5973_s9 = inlined_call_operand.vmem [shape: f32[1,32], index: 9, kind: input, shape index: {}]   ;;  %s5974_s10 = inlined_call_operand.vmem [shape: f32[32,64], index: 10, kind: input, shape index: {}]   ;;  %s5975_s11 = inlined_call_operand.vmem [shape: f32[1,64], index: 11, kind: input, shape index: {}]   ;;  %s5976_s12 = inlined_call_operand.vmem [shape: f32[64,32], index: 12, kind: input, shape index: {}]   ;;  %s5977_s13 = inlined_call_operand.vmem [shape: f32[1,32], index: 13, kind: input, shape index: {}]   ;;  %s5978_s14 = inlined_call_operand.vmem [shape: f32[2,2,32], index: 14, kind: input, shape index: {}]   ;;  %s5979_s15 = inlined_call_operand.vmem [shape: f32[2,2,32], index: 15, kind: input, shape index: {}]   ;;  %s5980_s16 = inlined_call_operand.vmem [shape: f32[32,128], index: 16, kind: input, shape index: {}]   ;;  %s5981_s17 = inlined_call_operand.vmem [shape: f32[32,128], index: 17, kind: input, shape index: {}]   ;;  %s5982_s18 = inlined_call_operand.vmem [shape: f32[1,128], index: 18, kind: input, shape index: {}]   ;;  %s5983_s19 = inlined_call_operand.vmem [shape: f32[32,128], index: 19, kind: input, shape index: {}]   ;;  %s5984_s20 = inlined_call_operand.vmem [shape: f32[32,128], index: 20, kind: input, shape index: {}]   ;;  %s5985_s21 = inlined_call_operand.vmem [shape: f32[1,128], index: 21, kind: input, shape index: {}]   ;;  %s5986_s22 = inlined_call_operand.vmem [shape: f32[32,32], index: 22, kind: input, shape index: {}]   ;;  %s5987_s23 = inlined_call_operand.vmem [shape: f32[32,32], index: 23, kind: input, shape index: {}]   ;;  %s5988_s24 = inlined_call_operand.vmem [shape: f32[1,32], index: 24, kind: input, shape index: {}]   ;;  %s5989_s25 = inlined_call_operand.hbm [shape: f32[2,32], index: 25, kind: output, shape index: {0}]   ;;  %s5990_s26 = inlined_call_operand.hbm [shape: f32[2,2,32], index: 26, kind: output, shape index: {1}]   ;;  %s5991_s27 = inlined_call_operand.hbm [shape: f32[2,2,32], index: 27, kind: output, shape index: {2}]  }
   0x1   :  { %5997 = sst [smem:[#allocation9_spill]] %s5964_s0 }
   0x2   :  { %5998 = sst [smem:[#allocation10_spill]] %s5965_s1 }
   0x3   :  { %5999 = sst [smem:[#allocation11_spill]] %s5966_s2 }
   0x4   :  { %6000 = sst [smem:[#allocation12_spill]] %s5967_s3 }
   0x5   :  { %6001 = sst [smem:[#allocation13_spill]] %s5968_s4 }
   0x6   :  { %6002 = sst [smem:[#allocation14_spill]] %s5969_s5 }
   0x7   :  { %6003 = sst [smem:[#allocation15_spill]] %s5970_s6 }
   0x8   :  { %6004 = sst [smem:[#allocation16_spill]] %s5971_s7 }
   0x9   :  { %6005 = sst [smem:[#allocation17_spill]] %s5972_s8 }
   0xa   :  { %6006 = sst [smem:[#allocation18_spill]] %s5973_s9 }
   0xb   :  { %6007 = sst [smem:[#allocation19_spill]] %s5974_s10 }
   0xc   :  { %6008 = sst [smem:[#allocation20_spill]] %s5975_s11 }
   0xd   :  { %33 = vsyncpa [#allocation3], 0  ;;  %s6009_s8 = sld [smem:[#allocation11_spill]]  ;;  %vm98_vm0 = vcmask 261120   ;;  %s6010_s6 = sld [smem:[#allocation9_spill]] }
  0x13   :  { %v87_v0 = vld [vmem:[%s6009_s8] sm:$0xff]  ;;  %v88_v1 = vld [vmem:[%s6009_s8 + $0x8] sm:$0xff]  ;;  %v89_v2 = vld [vmem:[%s6009_s8 + $0x10] sm:$0xff] }
  0x14   :  { %v4553_v3 = vpack.c.bf16 %v88_v1, %v87_v0  ;;  %v90_v4 = vld [vmem:[%s6009_s8 + $0x18] sm:$0xff]  ;;  %v5212_v5 = vld [vmem:[%s6010_s6] sm:$0xff] }
  0x15   :  { %v4557_v6 = vpack.c.bf16 %v90_v4, %v89_v2  ;;  %4121 = vmatprep.mubr.msk.f32.mxu0 %vm98_vm0, %v5212_v5 }
  0x16   :  { %34 = vsyncpa [#allocation5], 0  ;;  %4554 = vmatprep.subr.bf16.mxu0 %v4553_v3  ;;  %v5219_v7 = vld [vmem:[%s6010_s6 + $0x8] sm:$0xff]  ;;  %s6011_s4 = sld [smem:[#allocation12_spill]]  ;;  %s5047_s8 = smov 96   ;;  %vm275_vm2 = vcmask 130048  }
  0x17   :  { %4556 = vmatpush3.bf16.msra.mxu0 %v4553_v3  ;;  %vm4562_vm1 = vmpackc.low %vm98_vm0, %vm98_vm0  ;;  %s6012_s5 = sld [smem:[#allocation10_spill]]  ;;  %s5048_s10 = smov 64   ;;  %vm649_vm3 = vcmask 523264   ;;  %vm5050_vm4 = vmmov 0   ;;  %vm3602_vm8 = vcmask 254976  }
  0x18   :  { %4558 = vmatprep.subr.bf16.mxu0 %v4557_v6  ;;  %s6013_s6 = sld [smem:[#allocation13_spill]]  ;;  %s6014_s28 = sld [smem:[#allocation14_spill]] }
  0x19   :  { %s6015_s1 = sld [smem:[#allocation19_spill]]  ;;  %s6017_s29 = sld [smem:[#allocation16_spill]] }
  0x1a   :  { %s6018_s7 = sld [smem:[#allocation20_spill]]  ;;  %s6020_s11 = sld [smem:[#allocation18_spill]] }
  0x1b   :  { %4560 = vmatpush3.bf16.msra.mxu0 %v4557_v6 }
  0x1c   :  { %v3830_v8 = vld [vmem:[%s6011_s4] ss:$0 sm:$0xff] }
  0x1d   :  { %v272_v19 = vld [vmem:[%s6012_s5 + $0x8] sm:$0xff]  ;;  %v271_v22 = vld [vmem:[%s6012_s5] sm:$0xff]  ;;  %s6016_s5 = sld [smem:[#allocation15_spill]] }
  0x1e   :  { %4122 = vmatmul.mubr.msk.f32.vlgmr.msra.gmra.mrb[0].mxu0 %vm98_vm0, %v5219_v7  ;;  %v385_v38 = vld [vmem:[%s6013_s6] sm:$0xff]  ;;  %v386_v39 = vld [vmem:[%s6013_s6 + $0x8] sm:$0xff]  ;;  %v387_v40 = vld [vmem:[%s6013_s6 + $0x10] sm:$0xff] }
  0x1f   :  { %v4571_v41 = vpack.c.bf16 %v386_v39, %v385_v38  ;;  %v388_v42 = vld [vmem:[%s6013_s6 + $0x18] sm:$0xff]  ;;  %v3839_v56 = vld [vmem:[%s6014_s28] ss:$0 sm:$0xff]  ;;  %s5052_s28 = smov 32  }
  0x20   :  { %v4575_v43 = vpack.c.bf16 %v388_v42, %v387_v40  ;;  %v638_v39 = vld [vmem:[%s5976_s12 + $0x20] sm:$0xff]  ;;  %v639_v40 = vld [vmem:[%s5976_s12 + $0x28] sm:$0xff]  ;;  %v640_v42 = vld [vmem:[%s5976_s12 + $0x30] sm:$0xff] }
  0xf1   :  { %v4123_v9 = vpop.f32.mrb[0].mxu0 }
  0xf2   :  { %v177_v10 = vadd.f32 %v4123_v9, %v3830_v8  ;;  %v171_v11 = vpop.f32.mrb[1].mxu0 }
  0xf3   :  { %v172_v12 = vadd.f32 %v3830_v8, %v171_v11 }
  0xf5   :  { %4128 = vmatprep.mubr.msk.f32.mxu1 %vm98_vm0, %v172_v12  ;;  %v4817_v13 = vpack.i.bf16 %v177_v10, %v172_v12  ;;  %v525_v12 = vld [vmem:[%s6015_s1 + $0x8] sm:$0xff] }
  0xf7   :  { %4818 = vrot.lane.b32.xlu0 %v4817_v13, %s5047_s8 }
 0x169   :  { %v4819_v14 = vpop.permute.xlu0 %4818 }
 0x16a   :  { %v4821_v15 = vunpack.i.h.bf16 %v4819_v14  ;;  %v4820_v16 = vunpack.i.l.bf16 %v4819_v14  ;;  %v526_v14 = vld [vmem:[%s6015_s1 + $0x10] sm:$0xff] }
 0x16c   :  { %v4561_v17 = vpack.c.bf16 %v4821_v15, %v4820_v16  ;;  %v527_v15 = vld [vmem:[%s6015_s1 + $0x18] sm:$0xff] }
 0x16d   :  { %v4583_v16 = vpack.c.bf16 %v527_v15, %v526_v14 }
 0x16e   :  { %4563 = vmatprep.subr.msk.bf16.mxu1 %vm4562_vm1, %v4561_v17 }
 0x16f   :  { %4566 = vmatpush3.bf16.xpose.msk.msra.mxu1 %vm4562_vm1, %v4561_v17 }
 0x170   :  { %4572 = vmatprep.subr.bf16.mxu1 %v4571_v41 }
 0x176   :  { %4129 = vmatmul.mubr.msk.f32.vlgmr.msra.gmra.mrb[0].mxu1 %vm98_vm0, %v177_v10 }
 0x177   :  { %4574 = vmatpush3.bf16.msra.mxu1 %v4571_v41  ;;  %v4595_v41 = vpack.c.bf16 %v639_v40, %v638_v39  ;;  %v5388_v39 = vld [vmem:[%s6020_s11] ss:$0 sm:$0xff] }
 0x178   :  { %4576 = vmatprep.subr.bf16.mxu1 %v4575_v43 }
 0x17b   :  { %4578 = vmatpush3.bf16.msra.mxu1 %v4575_v43  ;;  %v641_v43 = vld [vmem:[%s5976_s12 + $0x38] sm:$0xff] }
 0x249   :  { %v4130_v18 = vpop.f32.mrb[0].mxu1 }
 0x24a   :  { %v270_v20 = vmul.f32 0.17677669, %v4130_v18  ;;  %v260_v21 = vpop.f32.mrb[1].mxu1 }
 0x24b   :  { %v269_v23 = vmul.f32 0.17677669, %v260_v21 }
 0x24c   :  { %v274_v24 = vadd.f32 %v272_v19, %v270_v20 }
 0x24d   :  { %v273_v25 = vadd.f32 %v271_v22, %v269_v23 }
 0x24e   :  { %v279_v26 = vsel %vm275_vm2, %v274_v24, -inf }
 0x24f   :  { %280 = vmax.xlane.f32.xlu1 %v279_v26  ;;  %v276_v27 = vsel %vm275_vm2, %v273_v25, -inf  ;;  %v3843_v26 = vld [vmem:[%s6017_s29] ss:$0 sm:$0xff]  ;;  %s6019_s29 = sld [smem:[#allocation17_spill]] }
 0x250   :  { %277 = vmax.xlane.f32.xlu0 %v276_v27 }
 0x2dc   :  { %v281_v28 = vpop.xlane.xlu1 %280 }
 0x2dd   :  { %v283_v29 = vsub.f32 %v274_v24, %v281_v28  ;;  %v278_v30 = vpop.xlane.xlu0 %277  ;;  %v3842_v24 = vld [vmem:[%s6016_s5] ss:$0 sm:$0xff] }
 0x2de   :  { %v282_v31 = vsub.f32 %v273_v25, %v278_v30 }
 0x2df   :  { %v286_v32 = vmul.f32 1.442695, %v283_v29 }
 0x2e0   :  { %v284_v33 = vmul.f32 1.442695, %v282_v31 }
 0x2e1   :  { %4827 = vpow2.f32 %v286_v32 }
 0x2e2   :  { %4829 = vpow2.f32 %v284_v33  ;;  %v634_v33 = vld [vmem:[%s5976_s12] sm:$0xff] }
 0x2eb   :  { %v4828_v34 = vpop.eup %4827 }
 0x2ec   :  { %v291_v35 = vsel %vm275_vm2, %v4828_v34, 0.0  ;;  %v4830_v36 = vpop.eup %4829 }
 0x2ed   :  { %292 = vadd.xlane.f32.xlu1 %v291_v35  ;;  %v288_v37 = vsel %vm275_vm2, %v4830_v36, 0.0 }
 0x2f1   :  { %289 = vadd.xlane.f32.xlu1 %v288_v37  ;;  %v637_v37 = vld [vmem:[%s5976_s12 + $0x18] sm:$0xff] }
 0x302   :  { %4823 = vrot.lane.b32.xlu1 %v4817_v13, %s5048_s10 }
 0x37a   :  { %v293_v44 = vpop.xlane.xlu1 %292 }
 0x37b   :  { %4831 = vrcp.f32 %v293_v44  ;;  %v4599_v44 = vpack.c.bf16 %v641_v43, %v640_v42 }
 0x37e   :  { %v290_v45 = vpop.xlane.xlu1 %289 }
 0x37f   :  { %4833 = vrcp.f32 %v290_v45  ;;  %v3844_v45 = vld [vmem:[%s6018_s7] ss:$0 sm:$0xff] }
 0x382   :  { %v4824_v46 = vpop.permute.xlu1 %4823 }
 0x383   :  { %v4826_v47 = vunpack.i.h.bf16 %v4824_v46  ;;  %v4825_v48 = vunpack.i.l.bf16 %v4824_v46 }
 0x385   :  { %v4567_v49 = vpack.c.bf16 %v4826_v47, %v4825_v48  ;;  %v4832_v50 = vpop.eup %4831 }
 0x386   :  { %v297_v53 = vmul.f32 %v4832_v50, %v4828_v34  ;;  %v635_v34 = vld [vmem:[%s5976_s12 + $0x8] sm:$0xff] }
 0x387   :  { %4568 = vmatprep.subr.bf16.mxu0 %v4567_v49  ;;  %v4587_v35 = vpack.c.bf16 %v635_v34, %v634_v33 }
 0x388   :  { %4570 = vmatpush3.bf16.msra.mxu0 %v4567_v49 }
 0x389   :  { %v4834_v51 = vpop.eup %4833  ;;  %4588 = vmatprep.subr.bf16.mxu1 %v4587_v35 }
 0x38a   :  { %v296_v52 = vmul.f32 %v4834_v51, %v4830_v36  ;;  %v636_v36 = vld [vmem:[%s5976_s12 + $0x10] sm:$0xff] }
 0x38b   :  { %v4591_v38 = vpack.c.bf16 %v637_v37, %v636_v36  ;;  %v5383_v37 = vld [vmem:[%s6019_s29] ss:$0 sm:$0xff] }
 0x38c   :  { %4135 = vmatprep.mubr.msk.f32.mxu0 %vm275_vm2, %v296_v52 }
 0x38d   :  { %4136 = vmatmul.mubr.msk.f32.vlgmr.msra.gmra.mrb[2].mxu0 %vm275_vm2, %v297_v53 }
 0x460   :  { %v4137_v54 = vpop.f32.mrb[2].mxu0 }
 0x461   :  { %v376_v55 = vpop.f32.mrb[3].mxu0 }
 0x462   :  { %4146 = vmatprep.mubr.msk.f32.mxu1 %vm98_vm0, %v376_v55 }
 0x463   :  { %4147 = vmatmul.mubr.msk.f32.vlgmr.msra.gmra.mrb[2].mxu1 %vm98_vm0, %v4137_v54 }
 0x464   :  { %4590 = vmatpush3.bf16.msra.mxu1 %v4587_v35 }
 0x465   :  { %4592 = vmatprep.subr.bf16.mxu1 %v4591_v38 }
 0x468   :  { %4594 = vmatpush3.bf16.msra.mxu1 %v4591_v38 }
 0x469   :  { %4596 = vmatprep.subr.bf16.mxu1 %v4595_v41 }
 0x46c   :  { %4598 = vmatpush3.bf16.msra.mxu1 %v4595_v41 }
 0x46d   :  { %4600 = vmatprep.subr.bf16.mxu1 %v4599_v44 }
 0x470   :  { %4602 = vmatpush3.bf16.msra.mxu1 %v4599_v44  ;;  %v5401_v44 = vld [vmem:[%s5982_s18] ss:$0 sm:$0xff] }
 0x536   :  { %v4148_v57 = vpop.f32.mrb[2].mxu1 }
 0x537   :  { %v474_v58 = vadd.f32 %v4148_v57, %v3839_v56  ;;  %v468_v59 = vpop.f32.mrb[3].mxu1 }
 0x538   :  { %v469_v60 = vadd.f32 %v3839_v56, %v468_v59 }
 0x539   :  { %v478_v61 = vadd.f32 %v474_v58, %v5219_v7 }
 0x53a   :  { %v477_v62 = vadd.f32 %v469_v60, %v5212_v5  ;;  %v524_v5 = vld [vmem:[%s6015_s1] sm:$0xff] }
 0x53b   :  { %v484_v63 = vsel %vm98_vm0, %v478_v61, 0.0  ;;  %v4579_v13 = vpack.c.bf16 %v525_v12, %v524_v5 }
 0x53c   :  { %485 = vadd.xlane.f32.xlu0 %v484_v63  ;;  %v481_v0 = vsel %vm98_vm0, %v477_v62, 0.0 }
 0x53d   :  { %482 = vadd.xlane.f32.xlu1 %v481_v0  ;;  %4580 = vmatprep.subr.bf16.mxu0 %v4579_v13 }
 0x53e   :  { %4582 = vmatpush3.bf16.msra.mxu0 %v4579_v13 }
 0x53f   :  { %4584 = vmatprep.subr.bf16.mxu0 %v4583_v16 }
 0x542   :  { %4586 = vmatpush3.bf16.msra.mxu0 %v4583_v16  ;;  %v786_v16 = vld [vmem:[%s5981_s17] sm:$0xff] }
 0x5c9   :  { %v486_v1 = vpop.xlane.xlu0 %485 }
 0x5ca   :  { %v489_v2 = vmul.f32 0.03125, %v486_v1  ;;  %v483_v3 = vpop.xlane.xlu1 %482 }
 0x5cb   :  { %v488_v4 = vmul.f32 0.03125, %v483_v3 }
 0x5cc   :  { %v491_v6 = vsub.f32 %v478_v61, %v489_v2 }
 0x5cd   :  { %v490_v8 = vsub.f32 %v477_v62, %v488_v4  ;;  %v3847_v4 = vld [vmem:[%s5977_s13] ss:$0 sm:$0xff] }
 0x5ce   :  { %v493_v11 = vmul.f32 %v491_v6, %v491_v6 }
 0x5cf   :  { %v492_v9 = vmul.f32 %v490_v8, %v490_v8 }
 0x5d0   :  { %v497_v7 = vsel %vm98_vm0, %v493_v11, 0.0 }
 0x5d1   :  { %v494_v10 = vsel %vm98_vm0, %v492_v9, 0.0 }
 0x5d2   :  { %495 = vadd.xlane.f32.xlu0 %v494_v10 }
 0x5d6   :  { %498 = vadd.xlane.f32.xlu0 %v497_v7 }
 0x65f   :  { %v496_v17 = vpop.xlane.xlu0 %495 }
 0x660   :  { %v500_v18 = vmul.f32 0.03125, %v496_v17  ;;  %v787_v17 = vld [vmem:[%s5981_s17 + $0x8] sm:$0xff] }
 0x662   :  { %v502_v19 = vadd.f32 1e-12, %v500_v18  ;;  %v5330_v18 = vpack.c.bf16 %v787_v17, %v786_v16 }
 0x663   :  { %v499_v20 = vpop.xlane.xlu0 %498 }
 0x664   :  { %4835 = vrsqrt.f32 %v502_v19  ;;  %v501_v21 = vmul.f32 0.03125, %v499_v20  ;;  %v5049_v19 = vmov 0.0|0.0   ;;  %v788_v20 = vld [vmem:[%s5981_s17 + $0x10] sm:$0xff] }
 0x665   :  { %4603 = vmatprep.subr.bf16.mxu0 %v5049_v19  ;;  %4615 = vmatprep.subr.bf16.mxu1 %v5049_v19 }
 0x666   :  { %v503_v22 = vadd.f32 1e-12, %v501_v21  ;;  %v789_v21 = vld [vmem:[%s5981_s17 + $0x18] sm:$0xff] }
 0x668   :  { %4837 = vrsqrt.f32 %v503_v22  ;;  %v5342_v22 = vpack.c.bf16 %v789_v21, %v788_v20 }
 0x66e   :  { %v4836_v23 = vpop.eup %4835 }
 0x66f   :  { %v506_v25 = vmul.f32 %v4836_v23, %v490_v8  ;;  %v782_v23 = vld [vmem:[%s5980_s16] sm:$0xff] }
 0x671   :  { %v514_v27 = vmul.f32 %v3842_v24, %v506_v25  ;;  %v5051_v25 = vmov 0.0  }
 0x672   :  { %v4838_v28 = vpop.eup %4837 }
 0x673   :  { %v507_v29 = vmul.f32 %v4838_v28, %v491_v6  ;;  %v522_v30 = vadd.f32 %v3843_v26, %v514_v27  ;;  %v784_v28 = vld [vmem:[%s5980_s16 + $0x10] sm:$0xff] }
 0x675   :  { %v515_v31 = vmul.f32 %v3842_v24, %v507_v29  ;;  %4157 = vmatprep.mubr.msk.f32.mxu0 %vm98_vm0, %v522_v30  ;;  %v783_v24 = vld [vmem:[%s5980_s16 + $0x8] sm:$0xff]  ;;  %v785_v29 = vld [vmem:[%s5980_s16 + $0x18] sm:$0xff] }
 0x676   :  { %v5357_v27 = vpack.c.bf16 %v783_v24, %v782_v23  ;;  %v5494_v24 = vld [vmem:[%s5985_s21] ss:$0 sm:$0xff] }
 0x677   :  { %v5286_v32 = vadd.f32 %v3843_v26, %v515_v31  ;;  %v800_v26 = vld [vmem:[%s5978_s14] sm:$0x3] }
 0x678   :  { %v801_v31 = vld [vmem:[%s5979_s15] sm:$0x3] }
 0x679   :  { %4158 = vmatmul.mubr.msk.f32.vlgmr.msra.gmra.mrb[4].mxu0 %vm98_vm0, %v5286_v32  ;;  %969 = vrot.lane.b32.xlu1 %v801_v31, %s5052_s28 }
 0x67a   :  { %4605 = vmatpush3.bf16.msra.mxu0 %v5330_v18  ;;  %4187 = vmatprep.mubr.msk.f32.mxu0 %vm5050_vm4, %v5051_v25 }
 0x67b   :  { %4606 = vmatprep.subr.bf16.mxu0 %v5049_v19 }
 0x67e   :  { %4608 = vmatpush3.bf16.msra.mxu0 %v5342_v22 }
 0x67f   :  { %4609 = vmatprep.subr.bf16.mxu0 %v5049_v19 }
 0x681   :  { %4188 = vmatmul.mubr.msk.f32.vlgmr.msra.gmra.mrb[6].mxu0 %vm98_vm0, %v800_v26 }
 0x682   :  { %4611 = vmatpush3.bf16.msra.mxu0 %v5357_v27  ;;  %4198 = vmatprep.mubr.msk.f32.mxu0 %vm5050_vm4, %v5051_v25 }
 0x683   :  { %4612 = vmatprep.subr.bf16.mxu0 %v5049_v19 }
 0x74c   :  { %v4159_v46 = vpop.f32.mrb[4].mxu0 }
 0x74d   :  { %v613_v47 = vadd.f32 %v4159_v46, %v3844_v45  ;;  %v607_v48 = vpop.f32.mrb[5].mxu0 }
 0x74e   :  { %v608_v49 = vadd.f32 %v3844_v45, %v607_v48 }
 0x74f   :  { %v617_v50 = vmul.f32 %v613_v47, %v613_v47 }
 0x750   :  { %v616_v51 = vmul.f32 %v608_v49, %v608_v49 }
 0x751   :  { %v619_v52 = vmul.f32 %v617_v50, %v613_v47 }
 0x752   :  { %v618_v53 = vmul.f32 %v616_v51, %v608_v49  ;;  %v777_v51 = vlaneseq }
 0x753   :  { %v621_v54 = vmul.f32 0.044715, %v619_v52 }
 0x754   :  { %v620_v55 = vmul.f32 0.044715, %v618_v53  ;;  %v876_v42 = vpop.f32.mrb[6].mxu0  ;;  %v778_v53 = vand.u32 127, %v777_v51 }
 0x755   :  { %v623_v56 = vadd.f32 %v621_v54, %v613_v47  ;;  %v4189_v43 = vpop.f32.mrb[7].mxu0  ;;  %v3628_v54 = vld [vmem:[%s5987_s23 + $0x10] sm:$0xff] }
 0x756   :  { %v622_v57 = vadd.f32 %v620_v55, %v608_v49  ;;  %vm779_vm5 = vcmp.ge.s32.totalorder %v778_v53, 64  ;;  %vm780_vm6 = vcmp.lt.s32.totalorder %v778_v53, 96 }
 0x757   :  { %v625_v58 = vmul.f32 0.7978846, %v623_v56  ;;  %vm5404_vm7 = vmand %vm779_vm5, %vm780_vm6 }
 0x758   :  { %v624_v59 = vmul.f32 0.7978846, %v622_v57 }
 0x759   :  { %4839 = vtanh.f32 %v625_v58 }
 0x75a   :  { %4841 = vtanh.f32 %v624_v59 }
 0x763   :  { %v4840_v60 = vpop.eup %4839 }
 0x764   :  { %v4842_v61 = vpop.eup %4841  ;;  %v629_v62 = vadd.f32 1.0, %v4840_v60  ;;  %v970_v60 = vpop.permute.xlu1 %969 }
 0x765   :  { %v628_v63 = vadd.f32 1.0, %v4842_v61 }
 0x766   :  { %v631_v0 = vmul.f32 0.5, %v629_v62 }
 0x767   :  { %v630_v1 = vmul.f32 0.5, %v628_v63 }
 0x768   :  { %v633_v3 = vmul.f32 %v631_v0, %v613_v47  ;;  %v795_v0 = vld [vmem:[%s5984_s20] sm:$0xff] }
 0x769   :  { %v632_v2 = vmul.f32 %v630_v1, %v608_v49  ;;  %v796_v1 = vld [vmem:[%s5984_s20 + $0x8] sm:$0xff] }
 0x76b   :  { %4176 = vmatprep.mubr.msk.f32.mxu1 %vm649_vm3, %v632_v2  ;;  %v797_v2 = vld [vmem:[%s5984_s20 + $0x10] sm:$0xff] }
 0x76c   :  { %4177 = vmatmul.mubr.msk.f32.vlgmr.msra.gmra.mrb[4].mxu1 %vm649_vm3, %v633_v3  ;;  %v5424_v3 = vpack.c.bf16 %v796_v1, %v795_v0 }
 0x76d   :  { %4209 = vmatprep.mubr.msk.f32.mxu1 %vm5050_vm4, %v5051_v25 }
 0x76e   :  { %4617 = vmatpush3.bf16.msra.mxu1 %v5424_v3 }
 0x76f   :  { %4618 = vmatprep.subr.bf16.mxu1 %v5049_v19 }
 0x83f   :  { %v4178_v6 = vpop.f32.mrb[4].mxu1 }
 0x840   :  { %v5320_v8 = vadd.f32 %v4178_v6, %v3847_v4  ;;  %v722_v9 = vpop.f32.mrb[5].mxu1  ;;  %v791_v6 = vld [vmem:[%s5983_s19] sm:$0xff] }
 0x841   :  { %v723_v10 = vadd.f32 %v3847_v4, %v722_v9  ;;  %v798_v4 = vld [vmem:[%s5984_s20 + $0x18] sm:$0xff]  ;;  %v792_v9 = vld [vmem:[%s5983_s19 + $0x8] sm:$0xff] }
 0x843   :  { %v731_v11 = vadd.f32 %v723_v10, %v522_v30  ;;  %v5372_v30 = vpack.c.bf16 %v785_v29, %v784_v28  ;;  %v5435_v10 = vpack.c.bf16 %v792_v9, %v791_v6 }
 0x845   :  { %v735_v7 = vsel %vm98_vm0, %v731_v11, 0.0  ;;  %4614 = vmatpush3.bf16.msra.mxu0 %v5372_v30 }
 0x846   :  { %736 = vadd.xlane.f32.xlu0 %v735_v7  ;;  %4621 = vmatprep.subr.bf16.mxu0 %v5049_v19  ;;  %v794_v7 = vld [vmem:[%s5983_s19 + $0x18] sm:$0xff] }
 0x8d3   :  { %v737_v5 = vpop.xlane.xlu0 %736 }
 0x8d4   :  { %v741_v12 = vmul.f32 0.03125, %v737_v5  ;;  %v5444_v5 = vpack.c.bf16 %v798_v4, %v797_v2 }
 0x8d6   :  { %v743_v13 = vsub.f32 %v731_v11, %v741_v12  ;;  %v793_v11 = vld [vmem:[%s5983_s19 + $0x10] sm:$0xff]  ;;  %4620 = vmatpush3.bf16.msra.mxu1 %v5444_v5 }
 0x8d7   :  { %v5448_v12 = vpack.c.bf16 %v794_v7, %v793_v11  ;;  %4627 = vmatprep.subr.bf16.mxu1 %v5049_v19 }
 0x8d8   :  { %v745_v14 = vmul.f32 %v743_v13, %v743_v13 }
 0x8da   :  { %v747_v15 = vsel %vm98_vm0, %v745_v14, 0.0 }
 0x8db   :  { %748 = vadd.xlane.f32.xlu0 %v747_v15 }
 0x968   :  { %v749_v33 = vpop.xlane.xlu0 %748 }
 0x969   :  { %v753_v34 = vmul.f32 0.03125, %v749_v33 }
 0x96b   :  { %v755_v35 = vadd.f32 1e-12, %v753_v34 }
 0x96d   :  { %4843 = vrsqrt.f32 %v755_v35 }
 0x977   :  { %v4844_v36 = vpop.eup %4843 }
 0x978   :  { %v759_v38 = vmul.f32 %v4844_v36, %v743_v13  ;;  %v3852_v13 = vld [vmem:[%s5978_s14 + $0x2] sm:$0x3] }
 0x979   :  { %4210 = vmatmul.mubr.msk.f32.vlgmr.msra.gmra.mrb[6].mxu1 %vm98_vm0, %v3852_v13 }
 0x97a   :  { %v767_v40 = vmul.f32 %v5383_v37, %v759_v38  ;;  %4629 = vmatpush3.bf16.msra.mxu1 %v5330_v18  ;;  %4231 = vmatprep.mubr.msk.f32.mxu1 %vm5050_vm4, %v5051_v25 }
 0x97b   :  { %4630 = vmatprep.subr.bf16.mxu1 %v5049_v19 }
 0x97c   :  { %v5392_v41 = vadd.f32 %v5388_v39, %v767_v40 }
 0x97e   :  { %4199 = vmatmul.mubr.msk.f32.vlgmr.msra.gmra.mrb[8].mxu0 %vm98_vm0, %v5392_v41  ;;  %4632 = vmatpush3.bf16.msra.mxu1 %v5342_v22  ;;  %v1173_v23 = vrot.slane %v5392_v41, 2 }
 0x97f   :  { %4220 = vmatprep.mubr.msk.f32.mxu0 %vm5050_vm4, %v5051_v25  ;;  %4623 = vmatpush3.bf16.msra.mxu0 %v5435_v10 }
 0x980   :  { %4624 = vmatprep.subr.bf16.mxu0 %v5049_v19  ;;  %4639 = vmatprep.subr.bf16.mxu1 %v5049_v19 }
 0x983   :  { %4626 = vmatpush3.bf16.msra.mxu0 %v5448_v12 }
 0x984   :  { %4633 = vmatprep.subr.bf16.mxu0 %v5049_v19 }
 0xa4c   :  { %v1058_v17 = vpop.f32.mrb[6].mxu1 }
 0xa4d   :  { %v4211_v20 = vpop.f32.mrb[7].mxu1 }
 0xa51   :  { %v949_v45 = vpop.f32.mrb[8].mxu0 }
 0xa52   :  { %v950_v46 = vadd.f32 %v949_v45, %v876_v42  ;;  %v4200_v47 = vpop.f32.mrb[9].mxu0 }
 0xa54   :  { %v959_v48 = vadd.f32 %v5401_v44, %v950_v46 }
 0xa56   :  { %v3857_v49 = vmul.f32 -1.442695, %v959_v48 }
 0xa58   :  { %4845 = vpow2.f32 %v3857_v49 }
 0xa59   :  { %4847 = vtanh.f32 %v959_v48 }
 0xa62   :  { %v4846_v50 = vpop.eup %4845 }
 0xa63   :  { %v964_v52 = vadd.f32 1.0, %v4846_v50  ;;  %v4848_v55 = vpop.eup %4847 }
 0xa65   :  { %4849 = vrcp.f32 %v964_v52  ;;  %v3853_v52 = vld [vmem:[%s5979_s15 + $0x2] sm:$0x3] }
 0xa6f   :  { %v4850_v56 = vpop.eup %4849 }
 0xa70   :  { %v967_v57 = vsel %vm5404_vm7, %v4848_v55, %v4850_v56 }
 0xa71   :  { %974 = vrot.lane.b32.xlu0 %v967_v57, %s5048_s10  ;;  %v972_v61 = vmul.f32 %v970_v60, %v967_v57 }
 0xae3   :  { %v975_v58 = vpop.permute.xlu0 %974 }
 0xae4   :  { %v977_v59 = vmul.f32 %v975_v58, %v967_v57 }
 0xae6   :  { %979 = vrot.lane.b32.xlu0 %v977_v59, %s5052_s28 }
 0xb58   :  { %v980_v62 = vpop.permute.xlu0 %979 }
 0xb59   :  { %v5412_v63 = vadd.f32 %v980_v62, %v972_v61 }
 0xb5b   :  { %4851 = vtanh.f32 %v5412_v63 }
 0xb65   :  { %v4852_v14 = vpop.eup %4851 }
 0xb66   :  { %985 = vrot.lane.b32.xlu0 %v4852_v14, %s5048_s10 }
 0xbd8   :  { %v986_v15 = vpop.permute.xlu0 %985 }
 0xbd9   :  { %v988_v16 = vmul.f32 %v986_v15, %v967_v57 }
 0xbdb   :  { %1063 = vrot.lane.b32.xlu1 %v988_v16, %s5052_s28 }
 0xc4d   :  { %v1064_v21 = vpop.permute.xlu1 %1063 }
 0xc4e   :  { %4221 = vmatmul.mubr.msk.f32.vlgmr.msra.gmra.mrb[10].mxu0 %vm98_vm0, %v1064_v21  ;;  %4232 = vmatmul.mubr.msk.f32.vlgmr.msra.gmra.mrb[8].mxu1 %vm98_vm0, %v1064_v21 }
 0xc4f   :  { %4635 = vmatpush3.bf16.msra.mxu0 %v5357_v27  ;;  %4242 = vmatprep.mubr.msk.f32.mxu0 %vm5050_vm4, %v5051_v25 }
 0xc50   :  { %4636 = vmatprep.subr.bf16.mxu0 %v5049_v19  ;;  %4641 = vmatpush3.bf16.msra.mxu1 %v5424_v3 }
 0xc51   :  { %4642 = vmatprep.subr.bf16.mxu1 %v5049_v19  ;;  %4253 = vmatprep.mubr.msk.f32.mxu1 %vm5050_vm4, %v5051_v25 }
 0xc53   :  { %4638 = vmatpush3.bf16.msra.mxu0 %v5372_v30 }
 0xc54   :  { %4644 = vmatpush3.bf16.msra.mxu1 %v5444_v5  ;;  %4645 = vmatprep.subr.bf16.mxu0 %v5049_v19 }
 0xc55   :  { %4651 = vmatprep.subr.bf16.mxu1 %v5049_v19 }
 0xc56   :  { %4243 = vmatmul.mubr.msk.f32.vlgmr.msra.gmra.mrb[12].mxu0 %vm98_vm0, %v1173_v23 }
 0xc57   :  { %4647 = vmatpush3.bf16.msra.mxu0 %v5435_v10  ;;  %4264 = vmatprep.mubr.msk.f32.mxu0 %vm5050_vm4, %v5051_v25 }
 0xc58   :  { %4648 = vmatprep.subr.bf16.mxu0 %v5049_v19 }
 0xc5b   :  { %4650 = vmatpush3.bf16.msra.mxu0 %v5448_v12 }
 0xc5c   :  { %4657 = vmatprep.subr.bf16.mxu0 %v5049_v19 }
 0xd21   :  { %v1133_v26 = vpop.f32.mrb[10].mxu0  ;;  %v1242_v28 = vpop.f32.mrb[8].mxu1 }
 0xd22   :  { %v1134_v29 = vadd.f32 %v1133_v26, %v1058_v17  ;;  %v4222_v31 = vpop.f32.mrb[11].mxu0  ;;  %v4233_v33 = vpop.f32.mrb[9].mxu1  ;;  %v1520_v17 = vrot.slane %v5392_v41, 4 }
 0xd24   :  { %v1143_v34 = vadd.f32 %v5494_v24, %v1134_v29 }
 0xd26   :  { %v3861_v35 = vmul.f32 -1.442695, %v1143_v34 }
 0xd28   :  { %4853 = vpow2.f32 %v3861_v35 }
 0xd29   :  { %v1314_v36 = vpop.f32.mrb[12].mxu0 }
 0xd2a   :  { %v1315_v38 = vadd.f32 %v1314_v36, %v1242_v28  ;;  %v4244_v40 = vpop.f32.mrb[13].mxu0 }
 0xd2c   :  { %v1318_v42 = vadd.f32 %v5401_v44, %v1315_v38 }
 0xd2e   :  { %v3864_v43 = vmul.f32 -1.442695, %v1318_v42 }
 0xd30   :  { %4855 = vpow2.f32 %v3864_v43 }
 0xd31   :  { %4857 = vtanh.f32 %v1143_v34 }
 0xd32   :  { %v4854_v45 = vpop.eup %4853 }
 0xd33   :  { %v1148_v46 = vadd.f32 1.0, %v4854_v45 }
 0xd35   :  { %4859 = vrcp.f32 %v1148_v46 }
 0xd36   :  { %4861 = vtanh.f32 %v1318_v42 }
 0xd3a   :  { %v4856_v47 = vpop.eup %4855 }
 0xd3b   :  { %v1323_v48 = vadd.f32 1.0, %v4856_v47  ;;  %v4858_v49 = vpop.eup %4857 }
 0xd3d   :  { %4863 = vrcp.f32 %v1323_v48 }
 0xd3f   :  { %v4860_v50 = vpop.eup %4859 }
 0xd40   :  { %v1151_v51 = vsel %vm5404_vm7, %v4858_v49, %v4860_v50  ;;  %v4862_v53 = vpop.eup %4861 }
 0xd41   :  { %1158 = vrot.lane.b32.xlu0 %v1151_v51, %s5048_s10 }
 0xd45   :  { %1153 = vrot.lane.b32.xlu0 %v3853_v52, %s5052_s28 }
 0xd47   :  { %v4864_v55 = vpop.eup %4863 }
 0xd48   :  { %v1326_v56 = vsel %vm5404_vm7, %v4862_v53, %v4864_v55 }
 0xd49   :  { %1329 = vrot.lane.b32.xlu1 %v1326_v56, %s5048_s10  ;;  %v1327_v2 = vmul.f32 %v1326_v56, %v5412_v63 }
 0xdb3   :  { %v1159_v57 = vpop.permute.xlu0 %1158 }
 0xdb4   :  { %v1161_v58 = vmul.f32 %v1159_v57, %v1151_v51 }
 0xdb6   :  { %1163 = vrot.lane.b32.xlu1 %v1161_v58, %s5052_s28 }
 0xdb7   :  { %v1154_v61 = vpop.permute.xlu0 %1153 }
 0xdb8   :  { %v1156_v62 = vmul.f32 %v1154_v61, %v1151_v51 }
 0xdbb   :  { %v1330_v59 = vpop.permute.xlu1 %1329 }
 0xdbc   :  { %v1332_v60 = vmul.f32 %v1330_v59, %v1326_v56 }
 0xdbe   :  { %1334 = vrot.lane.b32.xlu0 %v1332_v60, %s5052_s28 }
 0xe28   :  { %v1164_v0 = vpop.permute.xlu1 %1163 }
 0xe29   :  { %v5510_v1 = vadd.f32 %v1164_v0, %v1156_v62 }
 0xe2b   :  { %4865 = vtanh.f32 %v5510_v1 }
 0xe30   :  { %v1335_v4 = vpop.permute.xlu0 %1334 }
 0xe31   :  { %v5514_v6 = vadd.f32 %v1335_v4, %v1327_v2 }
 0xe33   :  { %4867 = vtanh.f32 %v5514_v6 }
 0xe35   :  { %v4866_v9 = vpop.eup %4865 }
 0xe36   :  { %1169 = vrot.lane.b32.xlu1 %v4866_v9, %s5048_s10 }
 0xe3d   :  { %v4868_v11 = vpop.eup %4867 }
 0xe3e   :  { %1340 = vrot.lane.b32.xlu0 %v4868_v11, %s5048_s10 }
 0xea8   :  { %v1170_v7 = vpop.permute.xlu1 %1169 }
 0xea9   :  { %v1172_v13 = vmul.f32 %v1170_v7, %v1151_v51 }
 0xeab   :  { %1345 = vrot.lane.b32.xlu1 %v1172_v13, %s5052_s28 }
 0xeb0   :  { %v1341_v14 = vpop.permute.xlu0 %1340 }
 0xeb1   :  { %v1343_v15 = vmul.f32 %v1341_v14, %v1326_v56 }
 0xeb3   :  { %1420 = vrot.lane.b32.xlu0 %v1343_v15, %s5052_s28 }
 0xf1d   :  { %v1346_v63 = vpop.permute.xlu1 %1345 }
 0xf1e   :  { %4254 = vmatmul.mubr.msk.f32.vlgmr.msra.gmra.mrb[10].mxu1 %vm98_vm0, %v1346_v63  ;;  %v1867_v63 = vrot.slane %v5392_v41, 6 }
 0xf1f   :  { %4653 = vmatpush3.bf16.msra.mxu1 %v5330_v18  ;;  %4275 = vmatprep.mubr.msk.f32.mxu1 %vm5050_vm4, %v5051_v25 }
 0xf20   :  { %4654 = vmatprep.subr.bf16.mxu1 %v5049_v19 }
 0xf23   :  { %4656 = vmatpush3.bf16.msra.mxu1 %v5342_v22 }
 0xf24   :  { %4663 = vmatprep.subr.bf16.mxu1 %v5049_v19 }
 0xf25   :  { %v1421_v16 = vpop.permute.xlu0 %1420 }
 0xf26   :  { %4265 = vmatmul.mubr.msk.f32.vlgmr.msra.gmra.mrb[14].mxu0 %vm98_vm0, %v1421_v16  ;;  %4276 = vmatmul.mubr.msk.f32.vlgmr.msra.gmra.mrb[12].mxu1 %vm98_vm0, %v1421_v16 }
 0xf27   :  { %4659 = vmatpush3.bf16.msra.mxu0 %v5357_v27  ;;  %4286 = vmatprep.mubr.msk.f32.mxu0 %vm5050_vm4, %v5051_v25 }
 0xf28   :  { %4660 = vmatprep.subr.bf16.mxu0 %v5049_v19  ;;  %4665 = vmatpush3.bf16.msra.mxu1 %v5424_v3 }
 0xf29   :  { %4666 = vmatprep.subr.bf16.mxu1 %v5049_v19  ;;  %4297 = vmatprep.mubr.msk.f32.mxu1 %vm5050_vm4, %v5051_v25 }
 0xf2b   :  { %4662 = vmatpush3.bf16.msra.mxu0 %v5372_v30 }
 0xf2c   :  { %4668 = vmatpush3.bf16.msra.mxu1 %v5444_v5  ;;  %4669 = vmatprep.subr.bf16.mxu0 %v5049_v19 }
 0xf2d   :  { %4675 = vmatprep.subr.bf16.mxu1 %v5049_v19 }
 0xf2e   :  { %4287 = vmatmul.mubr.msk.f32.vlgmr.msra.gmra.mrb[16].mxu0 %vm98_vm0, %v1520_v17 }
 0xf2f   :  { %4671 = vmatpush3.bf16.msra.mxu0 %v5435_v10  ;;  %4308 = vmatprep.mubr.msk.f32.mxu0 %vm5050_vm4, %v5051_v25 }
 0xf30   :  { %4672 = vmatprep.subr.bf16.mxu0 %v5049_v19 }
 0xf33   :  { %4674 = vmatpush3.bf16.msra.mxu0 %v5448_v12 }
 0xf34   :  { %4681 = vmatprep.subr.bf16.mxu0 %v5049_v19 }
 0xff1   :  { %v1415_v20 = vpop.f32.mrb[10].mxu1 }
 0xff2   :  { %v4255_v21 = vpop.f32.mrb[11].mxu1 }
 0xff9   :  { %v1490_v26 = vpop.f32.mrb[14].mxu0  ;;  %v1589_v28 = vpop.f32.mrb[12].mxu1 }
 0xffa   :  { %v1491_v29 = vadd.f32 %v1490_v26, %v1415_v20  ;;  %v4266_v31 = vpop.f32.mrb[15].mxu0  ;;  %v4277_v33 = vpop.f32.mrb[13].mxu1 }
 0xffc   :  { %v1494_v34 = vadd.f32 %v5494_v24, %v1491_v29 }
 0xffe   :  { %v3867_v35 = vmul.f32 -1.442695, %v1494_v34 }
0x1000   :  { %4869 = vpow2.f32 %v3867_v35 }
0x1001   :  { %v1661_v36 = vpop.f32.mrb[16].mxu0 }
0x1002   :  { %v1662_v38 = vadd.f32 %v1661_v36, %v1589_v28  ;;  %v4288_v40 = vpop.f32.mrb[17].mxu0 }
0x1004   :  { %v1665_v42 = vadd.f32 %v5401_v44, %v1662_v38 }
0x1006   :  { %v3870_v43 = vmul.f32 -1.442695, %v1665_v42 }
0x1008   :  { %4871 = vpow2.f32 %v3870_v43 }
0x1009   :  { %4873 = vtanh.f32 %v1494_v34 }
0x100a   :  { %v4870_v45 = vpop.eup %4869 }
0x100b   :  { %v1499_v46 = vadd.f32 1.0, %v4870_v45 }
0x100d   :  { %4875 = vrcp.f32 %v1499_v46 }
0x100e   :  { %4877 = vtanh.f32 %v1665_v42 }
0x1012   :  { %v4872_v47 = vpop.eup %4871 }
0x1013   :  { %v1670_v48 = vadd.f32 1.0, %v4872_v47  ;;  %v4874_v49 = vpop.eup %4873 }
0x1015   :  { %4879 = vrcp.f32 %v1670_v48 }
0x1017   :  { %v4876_v50 = vpop.eup %4875 }
0x1018   :  { %v1502_v51 = vsel %vm5404_vm7, %v4874_v49, %v4876_v50  ;;  %v4878_v52 = vpop.eup %4877 }
0x1019   :  { %1505 = vrot.lane.b32.xlu1 %v1502_v51, %s5048_s10  ;;  %v1503_v60 = vmul.f32 %v1502_v51, %v5510_v1 }
0x101f   :  { %v4880_v53 = vpop.eup %4879 }
0x1020   :  { %v1673_v55 = vsel %vm5404_vm7, %v4878_v52, %v4880_v53 }
0x1021   :  { %1676 = vrot.lane.b32.xlu0 %v1673_v55, %s5048_s10  ;;  %v1674_v0 = vmul.f32 %v1673_v55, %v5514_v6 }
0x108b   :  { %v1506_v56 = vpop.permute.xlu1 %1505 }
0x108c   :  { %v1508_v57 = vmul.f32 %v1506_v56, %v1502_v51 }
0x108e   :  { %1510 = vrot.lane.b32.xlu1 %v1508_v57, %s5052_s28 }
0x1093   :  { %v1677_v58 = vpop.permute.xlu0 %1676 }
0x1094   :  { %v1679_v59 = vmul.f32 %v1677_v58, %v1673_v55 }
0x1096   :  { %1681 = vrot.lane.b32.xlu0 %v1679_v59, %s5052_s28  ;;  %v732_v59 = vadd.f32 %v5320_v8, %v5286_v32 }
0x1100   :  { %v1511_v61 = vpop.permute.xlu1 %1510 }
0x1101   :  { %v5563_v62 = vadd.f32 %v1511_v61, %v1503_v60  ;;  %v738_v60 = vsel %vm98_vm0, %v732_v59, 0.0 }
0x1103   :  { %4881 = vtanh.f32 %v5563_v62 }
0x1108   :  { %v1682_v2 = vpop.permute.xlu0 %1681 }
0x1109   :  { %v5567_v4 = vadd.f32 %v1682_v2, %v1674_v0 }
0x110b   :  { %4883 = vtanh.f32 %v5567_v4 }
0x110d   :  { %v4882_v9 = vpop.eup %4881 }
0x110e   :  { %1516 = vrot.lane.b32.xlu1 %v4882_v9, %s5048_s10 }
0x1115   :  { %v4884_v11 = vpop.eup %4883 }
0x1116   :  { %1687 = vrot.lane.b32.xlu0 %v4884_v11, %s5048_s10 }
0x1180   :  { %v1517_v7 = vpop.permute.xlu1 %1516 }
0x1181   :  { %v1519_v1 = vmul.f32 %v1517_v7, %v1502_v51 }
0x1183   :  { %1692 = vrot.lane.b32.xlu1 %v1519_v1, %s5052_s28 }
0x1188   :  { %v1688_v13 = vpop.permute.xlu0 %1687 }
0x1189   :  { %v1690_v14 = vmul.f32 %v1688_v13, %v1673_v55 }
0x118b   :  { %1767 = vrot.lane.b32.xlu0 %v1690_v14, %s5052_s28 }
0x11f5   :  { %v1693_v6 = vpop.permute.xlu1 %1692 }
0x11f6   :  { %4298 = vmatmul.mubr.msk.f32.vlgmr.msra.gmra.mrb[14].mxu1 %vm98_vm0, %v1693_v6 }
0x11f7   :  { %4677 = vmatpush3.bf16.msra.mxu1 %v5330_v18  ;;  %4319 = vmatprep.mubr.msk.f32.mxu1 %vm5050_vm4, %v5051_v25 }
0x11f8   :  { %4678 = vmatprep.subr.bf16.mxu1 %v5049_v19 }
0x11fb   :  { %4680 = vmatpush3.bf16.msra.mxu1 %v5342_v22 }
0x11fc   :  { %4687 = vmatprep.subr.bf16.mxu1 %v5049_v19 }
0x11fd   :  { %v1768_v15 = vpop.permute.xlu0 %1767 }
0x11fe   :  { %4309 = vmatmul.mubr.msk.f32.vlgmr.msra.gmra.mrb[18].mxu0 %vm98_vm0, %v1768_v15  ;;  %4320 = vmatmul.mubr.msk.f32.vlgmr.msra.gmra.mrb[16].mxu1 %vm98_vm0, %v1768_v15 }
0x11ff   :  { %4683 = vmatpush3.bf16.msra.mxu0 %v5357_v27  ;;  %4330 = vmatprep.mubr.msk.f32.mxu0 %vm5050_vm4, %v5051_v25 }
0x1200   :  { %4684 = vmatprep.subr.bf16.mxu0 %v5049_v19  ;;  %4689 = vmatpush3.bf16.msra.mxu1 %v5424_v3 }
0x1201   :  { %4690 = vmatprep.subr.bf16.mxu1 %v5049_v19  ;;  %4341 = vmatprep.mubr.msk.f32.mxu1 %vm5050_vm4, %v5051_v25 }
0x1203   :  { %4686 = vmatpush3.bf16.msra.mxu0 %v5372_v30 }
0x1204   :  { %4692 = vmatpush3.bf16.msra.mxu1 %v5444_v5  ;;  %4693 = vmatprep.subr.bf16.mxu0 %v5049_v19 }
0x1205   :  { %4699 = vmatprep.subr.bf16.mxu1 %v5049_v19 }
0x1206   :  { %4331 = vmatmul.mubr.msk.f32.vlgmr.msra.gmra.mrb[20].mxu0 %vm98_vm0, %v1867_v63 }
0x1207   :  { %4695 = vmatpush3.bf16.msra.mxu0 %v5435_v10  ;;  %4352 = vmatprep.mubr.msk.f32.mxu0 %vm5050_vm4, %v5051_v25 }
0x1208   :  { %4696 = vmatprep.subr.bf16.mxu0 %v5049_v19 }
0x120b   :  { %4698 = vmatpush3.bf16.msra.mxu0 %v5448_v12 }
0x120c   :  { %4705 = vmatprep.subr.bf16.mxu0 %v5049_v19 }
0x12c9   :  { %v1762_v16 = vpop.f32.mrb[14].mxu1 }
0x12ca   :  { %v4299_v20 = vpop.f32.mrb[15].mxu1 }
0x12d1   :  { %v1837_v21 = vpop.f32.mrb[18].mxu0  ;;  %v1936_v26 = vpop.f32.mrb[16].mxu1 }
0x12d2   :  { %v1838_v28 = vadd.f32 %v1837_v21, %v1762_v16  ;;  %v4310_v29 = vpop.f32.mrb[19].mxu0  ;;  %v4321_v31 = vpop.f32.mrb[17].mxu1 }
0x12d3   :  { %v1175_v29 = vadd.f32 %v1173_v23, %v5392_v41 }
0x12d4   :  { %v1841_v33 = vadd.f32 %v5494_v24, %v1838_v28 }
0x12d6   :  { %v3873_v34 = vmul.f32 -1.442695, %v1841_v33 }
0x12d8   :  { %4885 = vpow2.f32 %v3873_v34 }
0x12d9   :  { %v2008_v35 = vpop.f32.mrb[20].mxu0 }
0x12da   :  { %v2009_v36 = vadd.f32 %v2008_v35, %v1936_v26  ;;  %v4332_v38 = vpop.f32.mrb[21].mxu0 }
0x12dc   :  { %v2012_v40 = vadd.f32 %v5401_v44, %v2009_v36 }
0x12de   :  { %v3876_v42 = vmul.f32 -1.442695, %v2012_v40 }
0x12e0   :  { %4887 = vpow2.f32 %v3876_v42 }
0x12e1   :  { %4889 = vtanh.f32 %v1841_v33  ;;  %v1522_v33 = vadd.f32 %v1520_v17, %v1175_v29 }
0x12e2   :  { %v4886_v43 = vpop.eup %4885 }
0x12e3   :  { %v1846_v45 = vadd.f32 1.0, %v4886_v43  ;;  %v1869_v36 = vadd.f32 %v1867_v63, %v1522_v33 }
0x12e5   :  { %4891 = vrcp.f32 %v1846_v45 }
0x12e6   :  { %4893 = vtanh.f32 %v2012_v40 }
0x12ea   :  { %v4888_v46 = vpop.eup %4887 }
0x12eb   :  { %v2017_v47 = vadd.f32 1.0, %v4888_v46  ;;  %v4890_v48 = vpop.eup %4889 }
0x12ed   :  { %4895 = vrcp.f32 %v2017_v47 }
0x12ef   :  { %v4892_v49 = vpop.eup %4891 }
0x12f0   :  { %v1849_v50 = vsel %vm5404_vm7, %v4890_v48, %v4892_v49  ;;  %v4894_v51 = vpop.eup %4893 }
0x12f1   :  { %1852 = vrot.lane.b32.xlu1 %v1849_v50, %s5048_s10  ;;  %v1850_v61 = vmul.f32 %v1849_v50, %v5563_v62 }
0x12f7   :  { %v4896_v52 = vpop.eup %4895 }
0x12f8   :  { %v2020_v53 = vsel %vm5404_vm7, %v4894_v51, %v4896_v52 }
0x12f9   :  { %2023 = vrot.lane.b32.xlu0 %v2020_v53, %s5048_s10  ;;  %v2021_v9 = vmul.f32 %v2020_v53, %v5567_v4 }
0x1363   :  { %v1853_v55 = vpop.permute.xlu1 %1852 }
0x1364   :  { %v1855_v56 = vmul.f32 %v1853_v55, %v1849_v50 }
0x1366   :  { %1857 = vrot.lane.b32.xlu1 %v1855_v56, %s5052_s28 }
0x136b   :  { %v2024_v57 = vpop.permute.xlu0 %2023 }
0x136c   :  { %v2026_v58 = vmul.f32 %v2024_v57, %v2020_v53 }
0x136e   :  { %2028 = vrot.lane.b32.xlu0 %v2026_v58, %s5052_s28 }
0x138a   :  { %739 = vadd.xlane.f32.xlu1 %v738_v60 }
0x13d8   :  { %v1858_v0 = vpop.permute.xlu1 %1857 }
0x13d9   :  { %v5619_v2 = vadd.f32 %v1858_v0, %v1850_v61 }
0x13db   :  { %4897 = vtanh.f32 %v5619_v2 }
0x13e0   :  { %v2029_v11 = vpop.permute.xlu0 %2028 }
0x13e1   :  { %v5623_v7 = vadd.f32 %v2029_v11, %v2021_v9 }
0x13e3   :  { %4899 = vtanh.f32 %v5623_v7 }
0x13e5   :  { %v4898_v1 = vpop.eup %4897 }
0x13e6   :  { %1863 = vrot.lane.b32.xlu0 %v4898_v1, %s5048_s10 }
0x13ed   :  { %v4900_v32 = vpop.eup %4899 }
0x13ee   :  { %2034 = vrot.lane.b32.xlu0 %v4900_v32, %s5048_s10 }
0x1417   :  { %v740_v8 = vpop.xlane.xlu1 %739 }
0x1418   :  { %v742_v62 = vmul.f32 0.03125, %v740_v8 }
0x141a   :  { %v744_v13 = vsub.f32 %v732_v59, %v742_v62 }
0x141c   :  { %v746_v14 = vmul.f32 %v744_v13, %v744_v13 }
0x141e   :  { %v750_v6 = vsel %vm98_vm0, %v746_v14, 0.0 }
0x141f   :  { %751 = vadd.xlane.f32.xlu0 %v750_v6 }
0x1458   :  { %v1864_v15 = vpop.permute.xlu0 %1863 }
0x1459   :  { %v1866_v4 = vmul.f32 %v1864_v15, %v1849_v50 }
0x145b   :  { %2039 = vrot.lane.b32.xlu1 %v1866_v4, %s5052_s28 }
0x1460   :  { %v2035_v16 = vpop.permute.xlu0 %2034 }
0x1461   :  { %v2037_v20 = vmul.f32 %v2035_v16, %v2020_v53 }
0x1463   :  { %2114 = vrot.lane.b32.xlu0 %v2037_v20, %s5052_s28 }
0x14ac   :  { %v752_v21 = vpop.xlane.xlu0 %751 }
0x14ad   :  { %v754_v26 = vmul.f32 0.03125, %v752_v21 }
0x14af   :  { %v756_v28 = vadd.f32 1e-12, %v754_v26 }
0x14b1   :  { %4901 = vrsqrt.f32 %v756_v28 }
0x14bb   :  { %v4902_v31 = vpop.eup %4901 }
0x14bc   :  { %v760_v34 = vmul.f32 %v4902_v31, %v744_v13 }
0x14be   :  { %v768_v35 = vmul.f32 %v5383_v37, %v760_v34 }
0x14c0   :  { %v5640_v38 = vadd.f32 %v5388_v39, %v768_v35 }
0x14c2   :  { %v5643_v40 = vadd.f32 %v1869_v36, %v5640_v38  ;;  %v2560_v31 = vrot.slane %v5640_v38, 2 }
0x14cd   :  { %v2040_v42 = vpop.permute.xlu1 %2039 }
0x14ce   :  { %4342 = vmatmul.mubr.msk.f32.vlgmr.msra.gmra.mrb[18].mxu1 %vm98_vm0, %v2040_v42 }
0x14cf   :  { %4701 = vmatpush3.bf16.msra.mxu1 %v5330_v18  ;;  %4363 = vmatprep.mubr.msk.f32.mxu1 %vm5050_vm4, %v5051_v25 }
0x14d0   :  { %4702 = vmatprep.subr.bf16.mxu1 %v5049_v19 }
0x14d3   :  { %4704 = vmatpush3.bf16.msra.mxu1 %v5342_v22 }
0x14d4   :  { %4711 = vmatprep.subr.bf16.mxu1 %v5049_v19 }
0x14d5   :  { %v2115_v37 = vpop.permute.xlu0 %2114 }
0x14d6   :  { %4353 = vmatmul.mubr.msk.f32.vlgmr.msra.gmra.mrb[22].mxu0 %vm98_vm0, %v2115_v37  ;;  %4364 = vmatmul.mubr.msk.f32.vlgmr.msra.gmra.mrb[20].mxu1 %vm98_vm0, %v2115_v37 }
0x14d7   :  { %4707 = vmatpush3.bf16.msra.mxu0 %v5357_v27  ;;  %4374 = vmatprep.mubr.msk.f32.mxu0 %vm5050_vm4, %v5051_v25 }
0x14d8   :  { %4708 = vmatprep.subr.bf16.mxu0 %v5049_v19  ;;  %4713 = vmatpush3.bf16.msra.mxu1 %v5424_v3 }
0x14d9   :  { %4714 = vmatprep.subr.bf16.mxu1 %v5049_v19  ;;  %4385 = vmatprep.mubr.msk.f32.mxu1 %vm5050_vm4, %v5051_v25 }
0x14db   :  { %4710 = vmatpush3.bf16.msra.mxu0 %v5372_v30 }
0x14dc   :  { %4716 = vmatpush3.bf16.msra.mxu1 %v5444_v5  ;;  %4717 = vmatprep.subr.bf16.mxu0 %v5049_v19 }
0x14dd   :  { %4723 = vmatprep.subr.bf16.mxu1 %v5049_v19 }
0x14de   :  { %4375 = vmatmul.mubr.msk.f32.vlgmr.msra.gmra.mrb[24].mxu0 %vm98_vm0, %v5640_v38 }
0x14df   :  { %4719 = vmatpush3.bf16.msra.mxu0 %v5435_v10  ;;  %4396 = vmatprep.mubr.msk.f32.mxu0 %vm5050_vm4, %v5051_v25 }
0x14e0   :  { %4720 = vmatprep.subr.bf16.mxu0 %v5049_v19 }
0x14e3   :  { %4722 = vmatpush3.bf16.msra.mxu0 %v5448_v12 }
0x14e4   :  { %4729 = vmatprep.subr.bf16.mxu0 %v5049_v19 }
0x15a1   :  { %v2109_v39 = vpop.f32.mrb[18].mxu1 }
0x15a2   :  { %v4343_v41 = vpop.f32.mrb[19].mxu1 }
0x15a9   :  { %v2184_v23 = vpop.f32.mrb[22].mxu0  ;;  %v2281_v17 = vpop.f32.mrb[20].mxu1 }
0x15aa   :  { %v2185_v63 = vadd.f32 %v2184_v23, %v2109_v39  ;;  %v4354_v43 = vpop.f32.mrb[23].mxu0  ;;  %v4365_v45 = vpop.f32.mrb[21].mxu1 }
0x15ac   :  { %v2188_v46 = vadd.f32 %v5494_v24, %v2185_v63 }
0x15ae   :  { %v3879_v47 = vmul.f32 -1.442695, %v2188_v46 }
0x15b0   :  { %4903 = vpow2.f32 %v3879_v47 }
0x15b1   :  { %v2354_v48 = vpop.f32.mrb[24].mxu0 }
0x15b2   :  { %v2355_v49 = vadd.f32 %v2354_v48, %v2281_v17  ;;  %v4376_v50 = vpop.f32.mrb[25].mxu0 }
0x15b4   :  { %v2358_v51 = vadd.f32 %v5401_v44, %v2355_v49 }
0x15b6   :  { %v3882_v52 = vmul.f32 -1.442695, %v2358_v51 }
0x15b8   :  { %4905 = vpow2.f32 %v3882_v52 }
0x15b9   :  { %4907 = vtanh.f32 %v2188_v46 }
0x15ba   :  { %v4904_v53 = vpop.eup %4903 }
0x15bb   :  { %v2193_v55 = vadd.f32 1.0, %v4904_v53 }
0x15bd   :  { %4909 = vrcp.f32 %v2193_v55 }
0x15be   :  { %4911 = vtanh.f32 %v2358_v51 }
0x15c2   :  { %v4906_v56 = vpop.eup %4905 }
0x15c3   :  { %v2363_v57 = vadd.f32 1.0, %v4906_v56  ;;  %v4908_v58 = vpop.eup %4907 }
0x15c5   :  { %4913 = vrcp.f32 %v2363_v57 }
0x15c7   :  { %v4910_v59 = vpop.eup %4909 }
0x15c8   :  { %v2196_v60 = vsel %vm5404_vm7, %v4908_v58, %v4910_v59  ;;  %v4912_v61 = vpop.eup %4911 }
0x15c9   :  { %2199 = vrot.lane.b32.xlu1 %v2196_v60, %s5048_s10  ;;  %v2197_v62 = vmul.f32 %v2196_v60, %v5619_v2 }
0x15cf   :  { %v4914_v0 = vpop.eup %4913 }
0x15d0   :  { %v2366_v9 = vsel %vm5404_vm7, %v4912_v61, %v4914_v0 }
0x15d1   :  { %2369 = vrot.lane.b32.xlu1 %v2366_v9, %s5048_s10  ;;  %v2367_v6 = vmul.f32 %v2366_v9, %v5623_v7 }
0x163b   :  { %v2200_v11 = vpop.permute.xlu1 %2199 }
0x163c   :  { %v2202_v1 = vmul.f32 %v2200_v11, %v2196_v60 }
0x163e   :  { %2204 = vrot.lane.b32.xlu1 %v2202_v1, %s5052_s28 }
0x1643   :  { %v2370_v32 = vpop.permute.xlu1 %2369 }
0x1644   :  { %v2372_v8 = vmul.f32 %v2370_v32, %v2366_v9 }
0x1646   :  { %2374 = vrot.lane.b32.xlu0 %v2372_v8, %s5052_s28 }
0x16b0   :  { %v2205_v13 = vpop.permute.xlu1 %2204 }
0x16b1   :  { %v5685_v14 = vadd.f32 %v2205_v13, %v2197_v62 }
0x16b3   :  { %4915 = vtanh.f32 %v5685_v14 }
0x16b8   :  { %v2375_v15 = vpop.permute.xlu0 %2374 }
0x16b9   :  { %v5689_v4 = vadd.f32 %v2375_v15, %v2367_v6 }
0x16bb   :  { %4917 = vtanh.f32 %v5689_v4 }
0x16bd   :  { %v4916_v16 = vpop.eup %4915 }
0x16be   :  { %2210 = vrot.lane.b32.xlu1 %v4916_v16, %s5048_s10 }
0x16c5   :  { %v4918_v20 = vpop.eup %4917 }
0x16c6   :  { %2380 = vrot.lane.b32.xlu0 %v4918_v20, %s5048_s10  ;;  %v2907_v20 = vrot.slane %v5640_v38, 4 }
0x1730   :  { %v2211_v21 = vpop.permute.xlu1 %2210 }
0x1731   :  { %v2213_v2 = vmul.f32 %v2211_v21, %v2196_v60 }
0x1733   :  { %2385 = vrot.lane.b32.xlu1 %v2213_v2, %s5052_s28 }
0x1738   :  { %v2381_v26 = vpop.permute.xlu0 %2380 }
0x1739   :  { %v2383_v28 = vmul.f32 %v2381_v26, %v2366_v9 }
0x173b   :  { %2460 = vrot.lane.b32.xlu0 %v2383_v28, %s5052_s28 }
0x17a5   :  { %v2386_v7 = vpop.permute.xlu1 %2385 }
0x17a6   :  { %4386 = vmatmul.mubr.msk.f32.vlgmr.msra.gmra.mrb[22].mxu1 %vm98_vm0, %v2386_v7 }
0x17a7   :  { %4725 = vmatpush3.bf16.msra.mxu1 %v5330_v18  ;;  %4407 = vmatprep.mubr.msk.f32.mxu1 %vm5050_vm4, %v5051_v25 }
0x17a8   :  { %4726 = vmatprep.subr.bf16.mxu1 %v5049_v19 }
0x17ab   :  { %4728 = vmatpush3.bf16.msra.mxu1 %v5342_v22 }
0x17ac   :  { %4735 = vmatprep.subr.bf16.mxu1 %v5049_v19 }
0x17ad   :  { %v2461_v29 = vpop.permute.xlu0 %2460 }
0x17ae   :  { %4397 = vmatmul.mubr.msk.f32.vlgmr.msra.gmra.mrb[26].mxu0 %vm98_vm0, %v2461_v29  ;;  %4408 = vmatmul.mubr.msk.f32.vlgmr.msra.gmra.mrb[24].mxu1 %vm98_vm0, %v2461_v29 }
0x17af   :  { %4731 = vmatpush3.bf16.msra.mxu0 %v5357_v27  ;;  %4418 = vmatprep.mubr.msk.f32.mxu0 %vm5050_vm4, %v5051_v25 }
0x17b0   :  { %4732 = vmatprep.subr.bf16.mxu0 %v5049_v19  ;;  %4737 = vmatpush3.bf16.msra.mxu1 %v5424_v3 }
0x17b1   :  { %4738 = vmatprep.subr.bf16.mxu1 %v5049_v19  ;;  %4429 = vmatprep.mubr.msk.f32.mxu1 %vm5050_vm4, %v5051_v25 }
0x17b3   :  { %4734 = vmatpush3.bf16.msra.mxu0 %v5372_v30 }
0x17b4   :  { %4740 = vmatpush3.bf16.msra.mxu1 %v5444_v5  ;;  %4741 = vmatprep.subr.bf16.mxu0 %v5049_v19 }
0x17b5   :  { %4747 = vmatprep.subr.bf16.mxu1 %v5049_v19 }
0x17b6   :  { %4419 = vmatmul.mubr.msk.f32.vlgmr.msra.gmra.mrb[28].mxu0 %vm98_vm0, %v2560_v31 }
0x17b7   :  { %4743 = vmatpush3.bf16.msra.mxu0 %v5435_v10  ;;  %4440 = vmatprep.mubr.msk.f32.mxu0 %vm5050_vm4, %v5051_v25 }
0x17b8   :  { %4744 = vmatprep.subr.bf16.mxu0 %v5049_v19 }
0x17bb   :  { %4746 = vmatpush3.bf16.msra.mxu0 %v5448_v12 }
0x17bc   :  { %4753 = vmatprep.subr.bf16.mxu0 %v5049_v19 }
0x1879   :  { %v2455_v33 = vpop.f32.mrb[22].mxu1 }
0x187a   :  { %v4387_v34 = vpop.f32.mrb[23].mxu1 }
0x1881   :  { %v2530_v35 = vpop.f32.mrb[26].mxu0  ;;  %v2629_v36 = vpop.f32.mrb[24].mxu1 }
0x1882   :  { %v2531_v42 = vadd.f32 %v2530_v35, %v2455_v33  ;;  %v4398_v37 = vpop.f32.mrb[27].mxu0  ;;  %v4409_v39 = vpop.f32.mrb[25].mxu1 }
0x1883   :  { %v5784_v39 = vld [vmem:[%s5982_s18] ss:$0 sm:$0xff] }
0x1884   :  { %v2534_v41 = vadd.f32 %v5494_v24, %v2531_v42 }
0x1886   :  { %v3885_v23 = vmul.f32 -1.442695, %v2534_v41 }
0x1888   :  { %4919 = vpow2.f32 %v3885_v23 }
0x1889   :  { %v2701_v17 = vpop.f32.mrb[28].mxu0 }
0x188a   :  { %v2702_v63 = vadd.f32 %v2701_v17, %v2629_v36  ;;  %v4420_v43 = vpop.f32.mrb[29].mxu0 }
0x188c   :  { %v2705_v45 = vadd.f32 %v5401_v44, %v2702_v63 }
0x188e   :  { %v3888_v46 = vmul.f32 -1.442695, %v2705_v45 }
0x1890   :  { %4921 = vpow2.f32 %v3888_v46 }
0x1891   :  { %4923 = vtanh.f32 %v2534_v41 }
0x1892   :  { %v4920_v47 = vpop.eup %4919 }
0x1893   :  { %v2539_v48 = vadd.f32 1.0, %v4920_v47 }
0x1895   :  { %4925 = vrcp.f32 %v2539_v48 }
0x1896   :  { %4927 = vtanh.f32 %v2705_v45 }
0x189a   :  { %v4922_v49 = vpop.eup %4921 }
0x189b   :  { %v2710_v50 = vadd.f32 1.0, %v4922_v49  ;;  %v4924_v51 = vpop.eup %4923 }
0x189d   :  { %4929 = vrcp.f32 %v2710_v50 }
0x189f   :  { %v4926_v52 = vpop.eup %4925 }
0x18a0   :  { %v2542_v53 = vsel %vm5404_vm7, %v4924_v51, %v4926_v52  ;;  %v4928_v55 = vpop.eup %4927 }
0x18a1   :  { %2545 = vrot.lane.b32.xlu1 %v2542_v53, %s5048_s10  ;;  %v2543_v61 = vmul.f32 %v2542_v53, %v5685_v14 }
0x18a7   :  { %v4930_v56 = vpop.eup %4929 }
0x18a8   :  { %v2713_v44 = vsel %vm5404_vm7, %v4928_v55, %v4930_v56 }
0x18a9   :  { %2716 = vrot.lane.b32.xlu0 %v2713_v44, %s5048_s10  ;;  %v2714_v11 = vmul.f32 %v2713_v44, %v5689_v4 }
0x1913   :  { %v2546_v57 = vpop.permute.xlu1 %2545 }
0x1914   :  { %v2548_v58 = vmul.f32 %v2546_v57, %v2542_v53 }
0x1916   :  { %2550 = vrot.lane.b32.xlu1 %v2548_v58, %s5052_s28 }
0x191b   :  { %v2717_v59 = vpop.permute.xlu0 %2716 }
0x191c   :  { %v2719_v60 = vmul.f32 %v2717_v59, %v2713_v44 }
0x191e   :  { %2721 = vrot.lane.b32.xlu0 %v2719_v60, %s5052_s28 }
0x1988   :  { %v2551_v0 = vpop.permute.xlu1 %2550 }
0x1989   :  { %v5738_v9 = vadd.f32 %v2551_v0, %v2543_v61 }
0x198b   :  { %4931 = vtanh.f32 %v5738_v9 }
0x1990   :  { %v2722_v1 = vpop.permute.xlu0 %2721 }
0x1991   :  { %v5742_v32 = vadd.f32 %v2722_v1, %v2714_v11 }
0x1993   :  { %4933 = vtanh.f32 %v5742_v32 }
0x1995   :  { %v4932_v8 = vpop.eup %4931 }
0x1996   :  { %2556 = vrot.lane.b32.xlu1 %v4932_v8, %s5048_s10 }
0x199d   :  { %v4934_v62 = vpop.eup %4933 }
0x199e   :  { %2727 = vrot.lane.b32.xlu0 %v4934_v62, %s5048_s10 }
0x1a08   :  { %v2557_v13 = vpop.permute.xlu1 %2556 }
0x1a09   :  { %v2559_v14 = vmul.f32 %v2557_v13, %v2542_v53 }
0x1a0b   :  { %2732 = vrot.lane.b32.xlu1 %v2559_v14, %s5052_s28 }
0x1a10   :  { %v2728_v6 = vpop.permute.xlu0 %2727 }
0x1a11   :  { %v2730_v15 = vmul.f32 %v2728_v6, %v2713_v44 }
0x1a13   :  { %2807 = vrot.lane.b32.xlu0 %v2730_v15, %s5052_s28 }
0x1a7d   :  { %v2733_v4 = vpop.permute.xlu1 %2732 }
0x1a7e   :  { %4430 = vmatmul.mubr.msk.f32.vlgmr.msra.gmra.mrb[26].mxu1 %vm98_vm0, %v2733_v4 }
0x1a7f   :  { %4749 = vmatpush3.bf16.msra.mxu1 %v5330_v18  ;;  %4451 = vmatprep.mubr.msk.f32.mxu1 %vm5050_vm4, %v5051_v25 }
0x1a80   :  { %4750 = vmatprep.subr.bf16.mxu1 %v5049_v19 }
0x1a83   :  { %4752 = vmatpush3.bf16.msra.mxu1 %v5342_v22 }
0x1a84   :  { %4759 = vmatprep.subr.bf16.mxu1 %v5049_v19 }
0x1a85   :  { %v2808_v16 = vpop.permute.xlu0 %2807 }
0x1a86   :  { %4441 = vmatmul.mubr.msk.f32.vlgmr.msra.gmra.mrb[30].mxu0 %vm98_vm0, %v2808_v16  ;;  %4452 = vmatmul.mubr.msk.f32.vlgmr.msra.gmra.mrb[28].mxu1 %vm98_vm0, %v2808_v16 }
0x1a87   :  { %4755 = vmatpush3.bf16.msra.mxu0 %v5357_v27  ;;  %4462 = vmatprep.mubr.msk.f32.mxu0 %vm5050_vm4, %v5051_v25 }
0x1a88   :  { %4756 = vmatprep.subr.bf16.mxu0 %v5049_v19  ;;  %4761 = vmatpush3.bf16.msra.mxu1 %v5424_v3 }
0x1a89   :  { %4762 = vmatprep.subr.bf16.mxu1 %v5049_v19  ;;  %4473 = vmatprep.mubr.msk.f32.mxu1 %vm5050_vm4, %v5051_v25 }
0x1a8b   :  { %4758 = vmatpush3.bf16.msra.mxu0 %v5372_v30 }
0x1a8c   :  { %4764 = vmatpush3.bf16.msra.mxu1 %v5444_v5  ;;  %4765 = vmatprep.subr.bf16.mxu0 %v5049_v19 }
0x1a8d   :  { %4771 = vmatprep.subr.bf16.mxu1 %v5049_v19 }
0x1a8e   :  { %4463 = vmatmul.mubr.msk.f32.vlgmr.msra.gmra.mrb[32].mxu0 %vm98_vm0, %v2907_v20 }
0x1a8f   :  { %4767 = vmatpush3.bf16.msra.mxu0 %v5435_v10  ;;  %4484 = vmatprep.mubr.msk.f32.mxu0 %vm5050_vm4, %v5051_v25 }
0x1a90   :  { %4768 = vmatprep.subr.bf16.mxu0 %v5049_v19 }
0x1a93   :  { %4770 = vmatpush3.bf16.msra.mxu0 %v5448_v12 }
0x1a94   :  { %4777 = vmatprep.subr.bf16.mxu0 %v5049_v19 }
0x1b51   :  { %v2802_v21 = vpop.f32.mrb[26].mxu1 }
0x1b52   :  { %v4431_v2 = vpop.f32.mrb[27].mxu1 }
0x1b59   :  { %v2877_v26 = vpop.f32.mrb[30].mxu0  ;;  %v2976_v28 = vpop.f32.mrb[28].mxu1 }
0x1b5a   :  { %v2878_v7 = vadd.f32 %v2877_v26, %v2802_v21  ;;  %v4442_v29 = vpop.f32.mrb[31].mxu0  ;;  %v4453_v33 = vpop.f32.mrb[29].mxu1 }
0x1b5c   :  { %v2881_v34 = vadd.f32 %v5494_v24, %v2878_v7 }
0x1b5e   :  { %v3891_v35 = vmul.f32 -1.442695, %v2881_v34 }
0x1b60   :  { %4935 = vpow2.f32 %v3891_v35 }
0x1b61   :  { %v3048_v36 = vpop.f32.mrb[32].mxu0 }
0x1b62   :  { %v3049_v42 = vadd.f32 %v3048_v36, %v2976_v28  ;;  %v4464_v37 = vpop.f32.mrb[33].mxu0 }
0x1b64   :  { %v3052_v41 = vadd.f32 %v5784_v39, %v3049_v42 }
0x1b66   :  { %v3894_v23 = vmul.f32 -1.442695, %v3052_v41 }
0x1b68   :  { %4937 = vpow2.f32 %v3894_v23 }
0x1b69   :  { %4939 = vtanh.f32 %v2881_v34 }
0x1b6a   :  { %v4936_v17 = vpop.eup %4935 }
0x1b6b   :  { %v2886_v63 = vadd.f32 1.0, %v4936_v17 }
0x1b6d   :  { %4941 = vrcp.f32 %v2886_v63 }
0x1b6e   :  { %4943 = vtanh.f32 %v3052_v41 }
0x1b72   :  { %v4938_v43 = vpop.eup %4937 }
0x1b73   :  { %v3057_v24 = vadd.f32 1.0, %v4938_v43  ;;  %v4940_v45 = vpop.eup %4939 }
0x1b75   :  { %4945 = vrcp.f32 %v3057_v24 }
0x1b77   :  { %v4942_v46 = vpop.eup %4941 }
0x1b78   :  { %v2889_v47 = vsel %vm5404_vm7, %v4940_v45, %v4942_v46  ;;  %v4944_v48 = vpop.eup %4943 }
0x1b79   :  { %2892 = vrot.lane.b32.xlu1 %v2889_v47, %s5048_s10  ;;  %v2890_v56 = vmul.f32 %v2889_v47, %v5738_v9 }
0x1b7f   :  { %v4946_v49 = vpop.eup %4945 }
0x1b80   :  { %v3060_v50 = vsel %vm5404_vm7, %v4944_v48, %v4946_v49 }
0x1b81   :  { %3063 = vrot.lane.b32.xlu0 %v3060_v50, %s5048_s10  ;;  %v3061_v58 = vmul.f32 %v3060_v50, %v5742_v32 }
0x1beb   :  { %v2893_v51 = vpop.permute.xlu1 %2892 }
0x1bec   :  { %v2895_v52 = vmul.f32 %v2893_v51, %v2889_v47 }
0x1bee   :  { %2897 = vrot.lane.b32.xlu1 %v2895_v52, %s5052_s28 }
0x1bf3   :  { %v3064_v53 = vpop.permute.xlu0 %3063 }
0x1bf4   :  { %v3066_v55 = vmul.f32 %v3064_v53, %v3060_v50 }
0x1bf6   :  { %3068 = vrot.lane.b32.xlu0 %v3066_v55, %s5052_s28 }
0x1c60   :  { %v2898_v44 = vpop.permute.xlu1 %2897 }
0x1c61   :  { %v5796_v57 = vadd.f32 %v2898_v44, %v2890_v56  ;;  %v2562_v56 = vadd.f32 %v2560_v31, %v5643_v40  ;;  %v3622_v44 = vld [vmem:[%s5986_s22] sm:$0xff]  ;;  %v3625_v40 = vld [vmem:[%s5986_s22 + $0x18] sm:$0xff] }
0x1c63   :  { %4947 = vtanh.f32 %v5796_v57 }
0x1c68   :  { %v3069_v59 = vpop.permute.xlu0 %3068 }
0x1c69   :  { %v5800_v60 = vadd.f32 %v3069_v59, %v3061_v58  ;;  %v2909_v59 = vadd.f32 %v2907_v20, %v2562_v56 }
0x1c6b   :  { %4949 = vtanh.f32 %v5800_v60 }
0x1c6d   :  { %v4948_v61 = vpop.eup %4947 }
0x1c6e   :  { %2903 = vrot.lane.b32.xlu1 %v4948_v61, %s5048_s10 }
0x1c75   :  { %v4950_v0 = vpop.eup %4949 }
0x1c76   :  { %3074 = vrot.lane.b32.xlu0 %v4950_v0, %s5048_s10 }
0x1ce0   :  { %v2904_v11 = vpop.permute.xlu1 %2903 }
0x1ce1   :  { %v2906_v9 = vmul.f32 %v2904_v11, %v2889_v47 }
0x1ce3   :  { %3079 = vrot.lane.b32.xlu1 %v2906_v9, %s5052_s28 }
0x1ce8   :  { %v3075_v1 = vpop.permute.xlu0 %3074 }
0x1ce9   :  { %v3077_v8 = vmul.f32 %v3075_v1, %v3060_v50 }
0x1ceb   :  { %3154 = vrot.lane.b32.xlu0 %v3077_v8, %s5052_s28 }
0x1d55   :  { %v3080_v32 = vpop.permute.xlu1 %3079 }
0x1d56   :  { %4474 = vmatmul.mubr.msk.f32.vlgmr.msra.gmra.mrb[30].mxu1 %vm98_vm0, %v3080_v32 }
0x1d57   :  { %4773 = vmatpush3.bf16.msra.mxu1 %v5330_v18  ;;  %4495 = vmatprep.mubr.msk.f32.mxu1 %vm5050_vm4, %v5051_v25  ;;  %v3254_v18 = vrot.slane %v5640_v38, 6 }
0x1d58   :  { %4774 = vmatprep.subr.bf16.mxu1 %v5049_v19 }
0x1d59   :  { %v3256_v20 = vadd.f32 %v3254_v18, %v2909_v59 }
0x1d5b   :  { %4776 = vmatpush3.bf16.msra.mxu1 %v5342_v22  ;;  %v3621_v0 = vmul.f32 0.125, %v3256_v20 }
0x1d5c   :  { %4783 = vmatprep.subr.bf16.mxu1 %v5049_v19 }
0x1d5d   :  { %v3155_v62 = vpop.permute.xlu0 %3154 }
0x1d5e   :  { %4485 = vmatmul.mubr.msk.f32.vlgmr.msra.gmra.mrb[34].mxu0 %vm98_vm0, %v3155_v62  ;;  %4496 = vmatmul.mubr.msk.f32.vlgmr.msra.gmra.mrb[32].mxu1 %vm98_vm0, %v3155_v62 }
0x1d5f   :  { %4779 = vmatpush3.bf16.msra.mxu0 %v5357_v27  ;;  %4506 = vmatprep.mubr.msk.f32.mxu0 %vm5050_vm4, %v5051_v25 }
0x1d60   :  { %4780 = vmatprep.subr.bf16.mxu0 %v5049_v19  ;;  %4785 = vmatpush3.bf16.msra.mxu1 %v5424_v3 }
0x1d61   :  { %4786 = vmatprep.subr.bf16.mxu1 %v5049_v19  ;;  %4517 = vmatprep.mubr.msk.f32.mxu1 %vm5050_vm4, %v5051_v25 }
0x1d63   :  { %4782 = vmatpush3.bf16.msra.mxu0 %v5372_v30 }
0x1d64   :  { %4788 = vmatpush3.bf16.msra.mxu1 %v5444_v5  ;;  %4789 = vmatprep.subr.bf16.mxu0 %v5049_v19 }
0x1d65   :  { %4795 = vmatprep.subr.bf16.mxu1 %v5049_v19 }
0x1d66   :  { %4507 = vmatmul.mubr.msk.f32.vlgmr.msra.gmra.mrb[36].mxu0 %vm98_vm0, %v3254_v18 }
0x1d67   :  { %4791 = vmatpush3.bf16.msra.mxu0 %v5435_v10  ;;  %4528 = vmatprep.mubr.msk.f32.mxu0 %vm5050_vm4, %v5051_v25  ;;  %v5841_v10 = vld [vmem:[%s5985_s21] ss:$0 sm:$0xff] }
0x1d68   :  { %4792 = vmatprep.subr.bf16.mxu0 %v5049_v19 }
0x1d6b   :  { %4794 = vmatpush3.bf16.msra.mxu0 %v5448_v12 }
0x1d6c   :  { %4801 = vmatprep.subr.bf16.mxu0 %v5049_v19 }
0x1e29   :  { %v3149_v22 = vpop.f32.mrb[30].mxu1 }
0x1e2a   :  { %v4475_v27 = vpop.f32.mrb[31].mxu1 }
0x1e31   :  { %v3224_v30 = vpop.f32.mrb[34].mxu0  ;;  %v3323_v3 = vpop.f32.mrb[32].mxu1 }
0x1e32   :  { %v3225_v5 = vadd.f32 %v3224_v30, %v3149_v22  ;;  %v4486_v13 = vpop.f32.mrb[35].mxu0  ;;  %v4497_v14 = vpop.f32.mrb[33].mxu1 }
0x1e34   :  { %v3228_v6 = vadd.f32 %v5841_v10, %v3225_v5 }
0x1e36   :  { %v3897_v15 = vmul.f32 -1.442695, %v3228_v6 }
0x1e38   :  { %4951 = vpow2.f32 %v3897_v15 }
0x1e39   :  { %v3395_v4 = vpop.f32.mrb[36].mxu0 }
0x1e3a   :  { %v3396_v12 = vadd.f32 %v3395_v4, %v3323_v3  ;;  %v4508_v16 = vpop.f32.mrb[37].mxu0  ;;  %v3626_v4 = vld [vmem:[%s5987_s23] sm:$0xff] }
0x1e3c   :  { %v3399_v21 = vadd.f32 %v5784_v39, %v3396_v12  ;;  %v3627_v12 = vld [vmem:[%s5987_s23 + $0x8] sm:$0xff] }
0x1e3d   :  { %v4796_v16 = vpack.c.bf16 %v3627_v12, %v3626_v4 }
0x1e3e   :  { %v3900_v2 = vmul.f32 -1.442695, %v3399_v21 }
0x1e40   :  { %4953 = vpow2.f32 %v3900_v2 }
0x1e41   :  { %4955 = vtanh.f32 %v3228_v6 }
0x1e42   :  { %v4952_v26 = vpop.eup %4951 }
0x1e43   :  { %v3233_v28 = vadd.f32 1.0, %v4952_v26 }
0x1e45   :  { %4957 = vrcp.f32 %v3233_v28 }
0x1e46   :  { %4959 = vtanh.f32 %v3399_v21  ;;  %v3629_v21 = vld [vmem:[%s5987_s23 + $0x18] sm:$0xff]  ;;  %s5053_s23 = smov [#allocation4]  }
0x1e47   :  { %v4799_v2 = vpack.c.bf16 %v3629_v21, %v3628_v54 }
0x1e4a   :  { %v4954_v7 = vpop.eup %4953 }
0x1e4b   :  { %v3404_v29 = vadd.f32 1.0, %v4954_v7  ;;  %v4956_v33 = vpop.eup %4955 }
0x1e4d   :  { %4961 = vrcp.f32 %v3404_v29 }
0x1e4f   :  { %v4958_v34 = vpop.eup %4957 }
0x1e50   :  { %v3236_v35 = vsel %vm5404_vm7, %v4956_v33, %v4958_v34  ;;  %v4960_v36 = vpop.eup %4959 }
0x1e51   :  { %3239 = vrot.lane.b32.xlu1 %v3236_v35, %s5048_s10  ;;  %v3237_v63 = vmul.f32 %v3236_v35, %v5796_v57  ;;  %v3623_v57 = vld [vmem:[%s5986_s22 + $0x8] sm:$0xff] }
0x1e52   :  { %v4802_v58 = vpack.c.bf16 %v3623_v57, %v3622_v44 }
0x1e57   :  { %v4962_v42 = vpop.eup %4961 }
0x1e58   :  { %v3407_v37 = vsel %vm5404_vm7, %v4960_v36, %v4962_v42 }
0x1e59   :  { %3410 = vrot.lane.b32.xlu0 %v3407_v37, %s5048_s10  ;;  %v3408_v45 = vmul.f32 %v3407_v37, %v5800_v60  ;;  %v3624_v60 = vld [vmem:[%s5986_s22 + $0x10] sm:$0xff] }
0x1e5a   :  { %v4805_v61 = vpack.c.bf16 %v3625_v40, %v3624_v60 }
0x1ec3   :  { %v3240_v39 = vpop.permute.xlu1 %3239 }
0x1ec4   :  { %v3242_v41 = vmul.f32 %v3240_v39, %v3236_v35 }
0x1ec6   :  { %3244 = vrot.lane.b32.xlu1 %v3242_v41, %s5052_s28 }
0x1ecb   :  { %v3411_v23 = vpop.permute.xlu0 %3410 }
0x1ecc   :  { %v3413_v17 = vmul.f32 %v3411_v23, %v3407_v37 }
0x1ece   :  { %3415 = vrot.lane.b32.xlu0 %v3413_v17, %s5052_s28 }
0x1f38   :  { %v3245_v43 = vpop.permute.xlu1 %3244 }
0x1f39   :  { %v3247_v24 = vadd.f32 %v3245_v43, %v3237_v63 }
0x1f3b   :  { %4963 = vtanh.f32 %v3247_v24 }
0x1f40   :  { %v3416_v46 = vpop.permute.xlu0 %3415 }
0x1f41   :  { %v5855_v47 = vadd.f32 %v3416_v46, %v3408_v45 }
0x1f43   :  { %4965 = vtanh.f32 %v5855_v47 }
0x1f45   :  { %v4964_v48 = vpop.eup %4963 }
0x1f46   :  { %3250 = vrot.lane.b32.xlu1 %v4964_v48, %s5048_s10 }
0x1f4d   :  { %v4966_v49 = vpop.eup %4965 }
0x1f4e   :  { %3421 = vrot.lane.b32.xlu0 %v4966_v49, %s5048_s10 }
0x1fb8   :  { %v3251_v50 = vpop.permute.xlu1 %3250 }
0x1fb9   :  { %v3253_v51 = vmul.f32 %v3251_v50, %v3236_v35 }
0x1fbb   :  { %3426 = vrot.lane.b32.xlu1 %v3253_v51, %s5052_s28 }
0x1fc0   :  { %v3422_v52 = vpop.permute.xlu0 %3421 }
0x1fc1   :  { %v3424_v53 = vmul.f32 %v3422_v52, %v3407_v37 }
0x1fc3   :  { %3501 = vrot.lane.b32.xlu0 %v3424_v53, %s5052_s28 }
0x202d   :  { %v3427_v55 = vpop.permute.xlu1 %3426 }
0x202e   :  { %4518 = vmatmul.mubr.msk.f32.vlgmr.msra.gmra.mrb[34].mxu1 %vm98_vm0, %v3427_v55 }
0x202f   :  { %4539 = vmatprep.mubr.msk.f32.mxu1 %vm5050_vm4, %v5051_v25  ;;  %4797 = vmatpush3.bf16.msra.mxu1 %v4796_v16 }
0x2030   :  { %4798 = vmatprep.subr.bf16.mxu1 %v5049_v19 }
0x2033   :  { %4800 = vmatpush3.bf16.msra.mxu1 %v4799_v2 }
0x2035   :  { %v3502_v31 = vpop.permute.xlu0 %3501 }
0x2036   :  { %3603 = vst.msk [vmem:[#allocation4] sm:$0x3] %vm3602_vm8, %v3502_v31  ;;  %4529 = vmatmul.mubr.msk.f32.vlgmr.msra.gmra.mrb[38].mxu0 %vm98_vm0, %v3502_v31 }
0x2037   :  { %4803 = vmatpush3.bf16.msra.mxu0 %v4802_v58  ;;  %4550 = vmatprep.mubr.msk.f32.mxu0 %vm5050_vm4, %v5051_v25 }
0x2038   :  { %4804 = vmatprep.subr.bf16.mxu0 %v5049_v19 }
0x203b   :  { %4806 = vmatpush3.bf16.msra.mxu0 %v4805_v61 }
0x203e   :  { %4551 = vmatmul.mubr.msk.f32.vlgmr.msra.gmra.mrb[40].mxu0 %vm98_vm0, %v3621_v0 }
0x2101   :  { %v3496_v11 = vpop.f32.mrb[34].mxu1 }
0x2102   :  { %v4519_v9 = vpop.f32.mrb[35].mxu1 }
0x2109   :  { %v3571_v1 = vpop.f32.mrb[38].mxu0 }
0x210a   :  { %v3572_v8 = vadd.f32 %v3571_v1, %v3496_v11  ;;  %v4530_v32 = vpop.f32.mrb[39].mxu0 }
0x210c   :  { %v3575_v62 = vadd.f32 %v5841_v10, %v3572_v8 }
0x210e   :  { %v3903_v22 = vmul.f32 -1.442695, %v3575_v62 }
0x2110   :  { %4967 = vpow2.f32 %v3903_v22 }
0x2111   :  { %v5891_v27 = vpop.f32.mrb[40].mxu0  ;;  %4969 = vtanh.f32 %v3575_v62 }
0x2112   :  { %v4552_v25 = vpop.f32.mrb[41].mxu0 }
0x211a   :  { %v4968_v30 = vpop.eup %4967 }
0x211b   :  { %v3580_v3 = vadd.f32 1.0, %v4968_v30  ;;  %v4970_v38 = vpop.eup %4969 }
0x211d   :  { %4971 = vrcp.f32 %v3580_v3 }
0x2127   :  { %v4972_v18 = vpop.eup %4971 }
0x2128   :  { %v3583_v5 = vsel %vm5404_vm7, %v4970_v38, %v4972_v18 }
0x2129   :  { %3586 = vrot.lane.b32.xlu1 %v3583_v5, %s5048_s10  ;;  %v3584_v10 = vmul.f32 %v3583_v5, %v3247_v24 }
0x219b   :  { %v3587_v13 = vpop.permute.xlu1 %3586 }
0x219c   :  { %v3589_v14 = vmul.f32 %v3587_v13, %v3583_v5 }
0x219e   :  { %3591 = vrot.lane.b32.xlu0 %v3589_v14, %s5052_s28 }
0x2210   :  { %v3592_v6 = vpop.permute.xlu0 %3591 }
0x2211   :  { %v3594_v15 = vadd.f32 %v3592_v6, %v3584_v10 }
0x2213   :  { %4973 = vtanh.f32 %v3594_v15 }
0x221d   :  { %v4974_v26 = vpop.eup %4973 }
0x221e   :  { %3597 = vrot.lane.b32.xlu1 %v4974_v26, %s5048_s10  ;;  %s3800_s10 = sshll.u32 %s5053_s23, 4  ;;  %s3801_s10 = int_to_ptr.vmem [resolvable:$true] %s3800_s10 }
0x221f   :  { %s4977_s19 = scalar_lea.vmem %s3801_s10, 64  ;;  %p4982_p1 = scmp.lt.s32.totalorder %s3801_s10, %s3801_s10 }
0x2220   :  { %p4978_p0 = scmp.ne.s32.totalorder %s3801_s10, %s4977_s19  ;;  %p4983_p2 = scmp.lt.s32.totalorder %s4977_s19, %s4977_s19 }
0x2222   :  { %3611 = vrot.lane.b32.xlu1 %v5855_v47, %s5047_s8  ;;  %p4984_p3 = por %p4983_p2, %p4982_p1 }
0x2224   :  { %p4985_p4 = pnand %p4984_p3, %p4978_p0 }
0x2290   :  { %v3598_v28 = vpop.permute.xlu1 %3597 }
0x2291   :  { %v3600_v7 = vmul.f32 %v3598_v28, %v3583_v5 }
0x2293   :  { %3605 = vrot.lane.b32.xlu0 %v3600_v7, %s5052_s28 }
0x2294   :  { %v3612_v29 = vpop.permute.xlu1 %3611 }
0x2295   :  { %3614 = vst.msk [vmem:[#allocation6] sm:$0x3] %vm3602_vm8, %v3612_v29 }
0x2297   :  { %3616 = vrot.lane.b32.xlu0 %v3594_v15, %s5047_s8 }
0x2305   :  { %v3606_v33 = vpop.permute.xlu0 %3605 }
0x2306   :  { %3609 = vst.msk [vmem:[#allocation4 + $0x2] sm:$0x3] %vm3602_vm8, %v3606_v33  ;;  %4540 = vmatmul.mubr.msk.f32.vlgmr.msra.gmra.mrb[36].mxu1 %vm98_vm0, %v3606_v33 }
0x2309   :  { %v3617_v19 = vpop.permute.xlu0 %3616 }
0x230a   :  { %3620 = vst.msk [vmem:[#allocation6 + $0x2] sm:$0x3] %vm3602_vm8, %v3617_v19 }
0x230b   :  { %4988 = shalt.err (!%p4985_p4)
}
0x230c   :  { %s4989_s12 = scalar_lea.hbm %s5990_s26, 64 }
0x230d   :  { %p4990_p5 = scmp.ne.s32.totalorder %s5990_s26, %s4989_s12  ;;  %p4993_p6 = scmp.lt.u32.totalorder %s4989_s12, %s5990_s26 }
0x230f   :  { %p4995_p7 = pnand %p4993_p6, %p4990_p5 }
0x2311   :  { %4998 = shalt.err (!%p4995_p7)
}
0x2312   :  { %s5054_s21 = smov 2   ;;  %s5055_s5 = smov [#allocation6]  }
0x2313   :  { %3806 = dma.vmem_to_hbm [thread:$0]  %s3801_s10, 64, %s5990_s26, [#allocation5], %s5052_s28, %s5052_s28, %s5054_s21  }
0x2314   :  { %s3812_s0 = sshll.u32 %s5055_s5, 4  ;;  %s3813_s0 = int_to_ptr.vmem [resolvable:$true] %s3812_s0 }
0x2315   :  { %s4999_s16 = scalar_lea.vmem %s3813_s0, 64  ;;  %p5004_p9 = scmp.lt.s32.totalorder %s3813_s0, %s3813_s0 }
0x2316   :  { %p5000_p8 = scmp.ne.s32.totalorder %s3813_s0, %s4999_s16  ;;  %p5005_p10 = scmp.lt.s32.totalorder %s4999_s16, %s4999_s16 }
0x2318   :  { %p5006_p11 = por %p5005_p10, %p5004_p9 }
0x231a   :  { %p5007_p12 = pnand %p5006_p11, %p5000_p8 }
0x231c   :  { %5010 = shalt.err (!%p5007_p12)
}
0x231d   :  { %s5011_s22 = scalar_lea.hbm %s5991_s27, 64 }
0x231e   :  { %p5012_p13 = scmp.ne.s32.totalorder %s5991_s27, %s5011_s22  ;;  %p5015_p0 = scmp.lt.u32.totalorder %s5011_s22, %s5991_s27 }
0x2320   :  { %p5017_p1 = pnand %p5015_p0, %p5012_p13 }
0x2322   :  { %5020 = shalt.err (!%p5017_p1)
}
0x2323   :  { %3818 = dma.vmem_to_hbm [thread:$0]  %s3813_s0, 64, %s5991_s27, [#allocation5], %s5052_s28, %s5052_s28, %s5054_s21  }
0x2324   :  { %v3906_v35 = vld [vmem:[%s5988_s24] ss:$0 sm:$0xff]  ;;  %s5056_s23 = smov [#allocation2]  }
0x2325   :  { %s3791_s10 = sshll.u32 %s5056_s23, 4  ;;  %s3792_s10 = int_to_ptr.vmem [resolvable:$true] %s3791_s10 }
0x2326   :  { %s5021_s19 = scalar_lea.vmem %s3792_s10, 32  ;;  %p5026_p3 = scmp.lt.s32.totalorder %s3792_s10, %s3792_s10 }
0x2327   :  { %p5022_p2 = scmp.ne.s32.totalorder %s3792_s10, %s5021_s19  ;;  %p5027_p4 = scmp.lt.s32.totalorder %s5021_s19, %s5021_s19 }
0x2329   :  { %p5028_p5 = por %p5027_p4, %p5026_p3 }
0x232b   :  { %p5029_p6 = pnand %p5028_p5, %p5022_p2 }
0x23d9   :  { %v3698_v34 = vpop.f32.mrb[36].mxu1 }
0x23da   :  { %v3772_v36 = vadd.f32 %v5891_v27, %v3698_v34  ;;  %v4541_v42 = vpop.f32.mrb[37].mxu1 }
0x23dc   :  { %v3782_v37 = vadd.f32 %v3906_v35, %v3772_v36 }
0x23de   :  { %v3783_v39 = vmax.f32 %v3782_v37, 0.0 }
0x23e0   :  { %3784 = vst.msk [vmem:[#allocation2] sm:$0x3] %vm3602_vm8, %v3783_v39 }
0x23e1   :  { %5032 = shalt.err (!%p5029_p6)
}
0x23e2   :  { %s5033_s24 = scalar_lea.hbm %s5989_s25, 32 }
0x23e3   :  { %p5034_p7 = scmp.ne.s32.totalorder %s5989_s25, %s5033_s24  ;;  %p5037_p8 = scmp.lt.u32.totalorder %s5033_s24, %s5989_s25 }
0x23e5   :  { %p5039_p9 = pnand %p5037_p8, %p5034_p7 }
0x23e7   :  { %5042 = shalt.err (!%p5039_p9)
}
0x23e8   :  { %3794 = dma.vmem_to_hbm [thread:$0]  %s3792_s10, 32, %s5989_s25, [#allocation3]  }
0x23e9   :  { %5043 = dma.done.wait [#allocation3], 32  }
0x23ea   :  { %5044 = vsyncadd [#allocation3], 4294967264 }
0x23eb   :  { %5045 = dma.done.wait [#allocation5], 128  }
0x23ec   :  { %5046 = vsyncadd [#allocation5], 4294967168 }
0x23ed   :  { %3828 = vsyncpa [#allocation3], 1 }
0x23ee   :  { %3829 = vsyncpa [#allocation5], 1 }

</bundles_post_ra>
